<compile_context>
chip_gen: v5e
topology: v5e:2x2
jax: 0.10.0
libtpu: 0.0.40
codegen_flags: <defaults>
</compile_context>

<pallas_src>
import functools

import jax
import jax.numpy as jnp
from jax import lax
from jax.experimental import pallas as pl
from jax.experimental.pallas import tpu as pltpu


def acblock_kernel(x_ref, w_ref, shift_ref, out_ref, band_ref):
    """One (batch, row-band) grid step of the fused ACBlock conv.

    x_ref    : (1, H, W+2, Cin)   compute-dtype input, W zero-padded by 1
    w_ref    : (3, 3, Cin, Coutp) fused 3x3 weight (BN scales folded in)
    shift_ref: (1, Coutp)         total BN shift (f32)
    out_ref  : (1, TH, W, Coutp)  output row band
    band_ref : (TH+2, W+2, Cin)   VMEM scratch: padded band incl. H halo rows
    """
    TH = out_ref.shape[1]
    W = out_ref.shape[2]
    Coutp = out_ref.shape[3]
    Wp = x_ref.shape[2]            # W + 2
    Cin = x_ref.shape[3]

    i = pl.program_id(1)
    nt = pl.num_programs(1)
    row0 = pl.multiple_of(i * TH, TH)

    zero_row = jnp.zeros((1, Wp, Cin), dtype=band_ref.dtype)

    # Interior rows of the band: image rows [row0, row0 + TH).
    band_ref[1:TH + 1, :, :] = x_ref[0, pl.ds(row0, TH), :, :]

    # Top halo row: image row row0 - 1, or zeros at the image border.
    @pl.when(i == 0)
    def _():
        band_ref[0:1, :, :] = zero_row

    @pl.when(i > 0)
    def _():
        band_ref[0:1, :, :] = x_ref[0, pl.ds(row0 - 1, 1), :, :]

    # Bottom halo row: image row row0 + TH, or zeros at the image border.
    @pl.when(i == nt - 1)
    def _():
        band_ref[TH + 1:TH + 2, :, :] = zero_row

    @pl.when(i < nt - 1)
    def _():
        band_ref[TH + 1:TH + 2, :, :] = x_ref[0, pl.ds(row0 + TH, 1), :, :]

    xb = band_ref[...]             # (TH+2, W+2, Cin)

    # Fused 3x3 conv: 9 shifted taps, each a (TH*W, Cin) x (Cin, Coutp) MXU
    # matmul, accumulated in f32.  Accumulator starts from the first tap.
    acc = None
    for dh in range(3):
        for dw in range(3):
            tap = xb[dh:dh + TH, dw:dw + W, :].reshape(TH * W, Cin)
            part = jnp.dot(tap, w_ref[dh, dw],
                           preferred_element_type=jnp.float32)
            acc = part if acc is None else acc + part

    out = acc + shift_ref[...]                      # (TH*W, Coutp) + (1, Coutp)
    out_ref[0] = out.reshape(TH, W, Coutp).astype(out_ref.dtype)


def fuse_acblock_params(w_sq, w_v, w_h, scale, shift):
    """Fold the three conv branches + inference-mode BNs into one 3x3 conv.

    w_sq: (3,3,Cin,Cout) HWIO;  w_v: (3,Cin,Cout) (kw=1 squeezed);
    w_h: (3,Cin,Cout) (kh=1 squeezed);  scale/shift: (3, Cout) for [sq, ver, hor].
    """
    w_fused = w_sq * scale[0]
    w_fused = w_fused.at[:, 1, :, :].add(w_v * scale[1])   # 3x1 hits column dw==1
    w_fused = w_fused.at[1, :, :, :].add(w_h * scale[2])   # 1x3 hits row dh==1
    shift_total = shift[0] + shift[1] + shift[2]
    return w_fused, shift_total


def acblock_forward_nhwc(x_nhwc, w_sq, w_v, w_h, scale, shift, *,
                         row_tile=None, compute_dtype=jnp.bfloat16):
    """x_nhwc: (B, H, W, Cin). Returns (B, H, W, Cout)."""
    B, H, W, Cin = x_nhwc.shape
    Cout = w_sq.shape[-1]

    # --- weight/BN fusion, done once outside the kernel in f32 -------------
    w_fused, shift_total = fuse_acblock_params(w_sq, w_v, w_h, scale, shift)

    # Lane-dense output: pad Cout up to a multiple of 128.
    coutp = ((Cout + 127) // 128) * 128
    w_fused = jnp.pad(w_fused, ((0, 0), (0, 0), (0, 0), (0, coutp - Cout)))
    shift_total = jnp.pad(shift_total, (0, coutp - Cout))
    w_fused = w_fused.astype(compute_dtype)
    shift_total = shift_total.reshape(1, coutp).astype(jnp.float32)

    # Zero-pad W only (fused by XLA with the dtype cast).  The H halo is built
    # inside the kernel, so no padded full-image copy round-trips HBM.
    x_p = jnp.pad(x_nhwc.astype(compute_dtype), ((0, 0), (0, 0), (1, 1), (0, 0)))

    # Row-band tiling over H (output written in halo'd bands).
    if row_tile is None:
        row_tile = H
        for th in range(min(H, 32), 0, -1):
            if H % th == 0:
                row_tile = th
                break
    assert H % row_tile == 0, (H, row_tile)
    nt = H // row_tile

    # VMEM budget: ~96 MiB on v5e/v6e (128 MiB physical), ~48 MiB on v7x (64 MiB).
    try:
        vmem_cap = pltpu.get_tpu_info().vmem_capacity_bytes
    except Exception:
        vmem_cap = 64 * 1024 * 1024
    vmem_limit = int(min(96 * 1024 * 1024, (vmem_cap * 3) // 4))

    # NOTE: for very large feature maps the input block should also be banded
    # (halo windows via manual DMA); here the input stays a per-batch resident
    # block (re-fetched only when the batch index changes) and only the output
    # is banded.
    out = pl.pallas_call(
        acblock_kernel,
        out_shape=jax.ShapeDtypeStruct((B, H, W, coutp), x_nhwc.dtype),
        grid=(B, nt),
        in_specs=[
            pl.BlockSpec((1, H, W + 2, Cin), lambda b, i: (b, 0, 0, 0)),
            pl.BlockSpec((3, 3, Cin, coutp), lambda b, i: (0, 0, 0, 0)),
            pl.BlockSpec((1, coutp), lambda b, i: (0, 0)),
        ],
        out_specs=pl.BlockSpec((1, row_tile, W, coutp),
                               lambda b, i: (b, i, 0, 0)),
        scratch_shapes=[pltpu.VMEM((row_tile + 2, W + 2, Cin), compute_dtype)],
        compiler_params=pltpu.CompilerParams(
            dimension_semantics=("parallel", "parallel"),
            vmem_limit_bytes=vmem_limit),
    )(x_p, w_fused, shift_total)

    return out[..., :Cout]


def acblock_forward(x_nchw, w_sq, w_v, w_h, scale, shift, *,
                    row_tile=None, compute_dtype=jnp.bfloat16):
    """x_nchw: (B, Cin, H, W). Returns (B, Cout, H, W) (PyTorch convention).

    The NCHW<->NHWC transposes exist only because the PyTorch module is NCHW;
    an NHWC pipeline should call acblock_forward_nhwc directly.
    """
    x_nhwc = jnp.transpose(x_nchw, (0, 2, 3, 1))
    out = acblock_forward_nhwc(x_nhwc, w_sq, w_v, w_h, scale, shift,
                               row_tile=row_tile, compute_dtype=compute_dtype)
    return jnp.transpose(out, (0, 3, 1, 2))


def reference_forward(x_nchw, w_sq, w_v, w_h, scale, shift):
    """Pure-JAX f32 reference with the original (unfused) branches."""
    x = jnp.transpose(x_nchw, (0, 2, 3, 1)).astype(jnp.float32)
    dn = ("NHWC", "HWIO", "NHWC")

    def conv(xi, w, ph, pw):
        return lax.conv_general_dilated(
            xi, w.astype(jnp.float32), window_strides=(1, 1),
            padding=((ph, ph), (pw, pw)), dimension_numbers=dn)

    sq = conv(x, w_sq, 1, 1) * scale[0] + shift[0]
    ver = conv(x, w_v.reshape(3, 1, *w_v.shape[1:]), 1, 0) * scale[1] + shift[1]
    hor = conv(x, w_h.reshape(1, 3, *w_h.shape[1:]), 0, 1) * scale[2] + shift[2]
    out = sq + ver + hor
    return jnp.transpose(out, (0, 3, 1, 2)).astype(x_nchw.dtype)


def fused_reference(x_nchw, w_fused, shift_total, compute_dtype):
    """Reference matching the kernel's bf16 input/weight rounding exactly
    (differences vs. the kernel reduce to f32 accumulation order)."""
    x = jnp.transpose(x_nchw, (0, 2, 3, 1)).astype(compute_dtype).astype(jnp.float32)
    w = w_fused.astype(compute_dtype).astype(jnp.float32)
    out = lax.conv_general_dilated(
        x, w, window_strides=(1, 1), padding=((1, 1), (1, 1)),
        dimension_numbers=("NHWC", "HWIO", "NHWC")) + shift_total
    return jnp.transpose(out, (0, 3, 1, 2)).astype(x_nchw.dtype)


if __name__ == "__main__":
    # Shapes consistent with ACBlock(in_channels=4, out_channels=8,
    # kernel_size=3, padding=1, stride=1).
    B, Cin, Cout, H, W = 2, 4, 8, 16, 16
    eps = 1e-5

    key = jax.random.PRNGKey(0)
    kx, ksq, kv, kh, kbn = jax.random.split(key, 5)

    x = jax.random.normal(kx, (B, Cin, H, W), dtype=jnp.float32)

    # Conv weights in HWIO (kh, kw, Cin, Cout); values synthetic/deterministic.
    w_sq = 0.1 * jax.random.normal(ksq, (3, 3, Cin, Cout), dtype=jnp.float32)
    w_v = 0.1 * jax.random.normal(kv, (3, Cin, Cout), dtype=jnp.float32)   # (3,1) kernel
    w_h = 0.1 * jax.random.normal(kh, (3, Cin, Cout), dtype=jnp.float32)   # (1,3) kernel

    # Inference-mode BN params for [square_bn, ver_bn, hor_bn] -> scale/shift.
    kg, kb, km, kvv = jax.random.split(kbn, 4)
    gamma = 1.0 + 0.1 * jax.random.normal(kg, (3, Cout), dtype=jnp.float32)
    beta = 0.1 * jax.random.normal(kb, (3, Cout), dtype=jnp.float32)
    run_mean = 0.1 * jax.random.normal(km, (3, Cout), dtype=jnp.float32)
    run_var = 0.5 + jax.random.uniform(kvv, (3, Cout), dtype=jnp.float32)
    scale = gamma / jnp.sqrt(run_var + eps)
    shift = beta - run_mean * scale

    # row_tile=8 -> 2 row bands per image: exercises the halo path and gives
    # the (parallel, parallel) grid 4 steps.
    fwd = jax.jit(functools.partial(acblock_forward, row_tile=8,
                                    compute_dtype=jnp.bfloat16))
    out = jax.block_until_ready(fwd(x, w_sq, w_v, w_h, scale, shift))
    assert out.shape == (B, Cout, H, W), out.shape

    # Tight check: same bf16 rounding of inputs/weights as the kernel, so the
    # only remaining difference is accumulation order.
    w_fused, shift_total = fuse_acblock_params(w_sq, w_v, w_h, scale, shift)
    ref_tight = fused_reference(x, w_fused, shift_total, jnp.bfloat16)
    assert jnp.allclose(out, ref_tight, atol=2e-3, rtol=2e-3), \
        float(jnp.max(jnp.abs(out - ref_tight)))

    # Semantic check vs. the true f32 module reference (tolerance sized for
    # the bf16 MXU fast path).
    ref = reference_forward(x, w_sq, w_v, w_h, scale, shift)
    assert jnp.allclose(out, ref, atol=5e-2, rtol=5e-2), \
        float(jnp.max(jnp.abs(out - ref)))

    print("KERNEL_OK")
</pallas_src>

<mosaic_0001>
module attributes {stable_mosaic.version = 11 : i64} {
  func.func @acblock_kernel(%arg0: i32, %arg1: i32, %arg2: memref<1x16x18x4xbf16, #tpu.memory_space<vmem>>, %arg3: memref<3x3x4x128xbf16, #tpu.memory_space<vmem>>, %arg4: memref<1x128xf32, #tpu.memory_space<vmem>>, %arg5: memref<1x8x16x128xf32, #tpu.memory_space<vmem>>, %arg6: memref<10x18x4xbf16, #tpu.memory_space<vmem>>) attributes {dimension_semantics = [#tpu.dimension_semantics<parallel>, #tpu.dimension_semantics<parallel>], iteration_bounds = array<i64: 2, 2>, scalar_prefetch = 0 : i64, scratch_operands = 1 : i64, tpu.core_type = #tpu.core_type<tc>, window_params = [{transform_indices = @transform_0, window_bounds = array<i64: 1, 16, 18, 4>}, {pipeline_mode = #tpu.pipeline_mode<synchronous>, transform_indices = @transform_1, window_bounds = array<i64: 3, 3, 4, 128>}, {pipeline_mode = #tpu.pipeline_mode<synchronous>, transform_indices = @transform_2, window_bounds = array<i64: 1, 128>}, {transform_indices = @transform_3, window_bounds = array<i64: 1, 8, 16, 128>}]} {
    %c8_i32 = arith.constant 8 : i32
    %0 = arith.muli %arg1, %c8_i32 : i32
    %1 = tpu.assume_multiple %0, 8 : i32
    %cst = arith.constant 0.000000e+00 : bf16
    %2 = vector.broadcast %cst : bf16 to vector<1x18x4xbf16>
    %c0 = arith.constant 0 : index
    %3 = arith.index_cast %1 : i32 to index
    %c0_0 = arith.constant 0 : index
    %c0_1 = arith.constant 0 : index
    %4 = vector.load %arg2[%c0, %3, %c0_0, %c0_1] : memref<1x16x18x4xbf16, #tpu.memory_space<vmem>>, vector<1x8x18x4xbf16>
    %5 = vector.shape_cast %4 : vector<1x8x18x4xbf16> to vector<8x18x4xbf16>
    %c1 = arith.constant 1 : index
    %c0_2 = arith.constant 0 : index
    %c0_3 = arith.constant 0 : index
    %6 = vector.load %arg6[%c1, %c0_2, %c0_3] : memref<10x18x4xbf16, #tpu.memory_space<vmem>>, vector<8x18x4xbf16>
    tpu.vector_store %arg6[%c1, %c0_2, %c0_3], %5 {strides = array<i32>} : memref<10x18x4xbf16, #tpu.memory_space<vmem>>, vector<8x18x4xbf16>,
    %c0_i32 = arith.constant 0 : i32
    %7 = arith.cmpi eq, %arg1, %c0_i32 : i32
    %8 = arith.extui %7 : i1 to i32
    %c0_i32_4 = arith.constant 0 : i32
    %9 = arith.cmpi ne, %8, %c0_i32_4 : i32
    scf.if %9 {
      %c0_63 = arith.constant 0 : index
      %c0_64 = arith.constant 0 : index
      %c0_65 = arith.constant 0 : index
      %80 = vector.load %arg6[%c0_63, %c0_64, %c0_65] : memref<10x18x4xbf16, #tpu.memory_space<vmem>>, vector<1x18x4xbf16>
      tpu.vector_store %arg6[%c0_63, %c0_64, %c0_65], %2 {strides = array<i32>} : memref<10x18x4xbf16, #tpu.memory_space<vmem>>, vector<1x18x4xbf16>,
    } else {
    }
    %c0_i32_5 = arith.constant 0 : i32
    %10 = arith.cmpi sgt, %arg1, %c0_i32_5 : i32
    %11 = arith.extui %10 : i1 to i32
    %c0_i32_6 = arith.constant 0 : i32
    %12 = arith.cmpi ne, %11, %c0_i32_6 : i32
    scf.if %12 {
      %c1_i32_63 = arith.constant 1 : i32
      %80 = arith.subi %1, %c1_i32_63 : i32
      %c0_64 = arith.constant 0 : index
      %81 = arith.index_cast %80 : i32 to index
      %c0_65 = arith.constant 0 : index
      %c0_66 = arith.constant 0 : index
      %82 = vector.load %arg2[%c0_64, %81, %c0_65, %c0_66] : memref<1x16x18x4xbf16, #tpu.memory_space<vmem>>, vector<1x1x18x4xbf16>
      %83 = vector.shape_cast %82 : vector<1x1x18x4xbf16> to vector<1x18x4xbf16>
      %c0_67 = arith.constant 0 : index
      %c0_68 = arith.constant 0 : index
      %c0_69 = arith.constant 0 : index
      %84 = vector.load %arg6[%c0_67, %c0_68, %c0_69] : memref<10x18x4xbf16, #tpu.memory_space<vmem>>, vector<1x18x4xbf16>
      tpu.vector_store %arg6[%c0_67, %c0_68, %c0_69], %83 {strides = array<i32>} : memref<10x18x4xbf16, #tpu.memory_space<vmem>>, vector<1x18x4xbf16>,
    } else {
    }
    %c1_i32 = arith.constant 1 : i32
    %13 = arith.cmpi eq, %arg1, %c1_i32 : i32
    %14 = arith.extui %13 : i1 to i32
    %c0_i32_7 = arith.constant 0 : i32
    %15 = arith.cmpi ne, %14, %c0_i32_7 : i32
    scf.if %15 {
      %c9 = arith.constant 9 : index
      %c0_63 = arith.constant 0 : index
      %c0_64 = arith.constant 0 : index
      %80 = vector.load %arg6[%c9, %c0_63, %c0_64] : memref<10x18x4xbf16, #tpu.memory_space<vmem>>, vector<1x18x4xbf16>
      tpu.vector_store %arg6[%c9, %c0_63, %c0_64], %2 {strides = array<i32>} : memref<10x18x4xbf16, #tpu.memory_space<vmem>>, vector<1x18x4xbf16>,
    } else {
    }
    %c1_i32_8 = arith.constant 1 : i32
    %16 = arith.cmpi slt, %arg1, %c1_i32_8 : i32
    %17 = arith.extui %16 : i1 to i32
    %c0_i32_9 = arith.constant 0 : i32
    %18 = arith.cmpi ne, %17, %c0_i32_9 : i32
    scf.if %18 {
      %c8_i32_63 = arith.constant 8 : i32
      %80 = arith.addi %1, %c8_i32_63 : i32
      %c0_64 = arith.constant 0 : index
      %81 = arith.index_cast %80 : i32 to index
      %c0_65 = arith.constant 0 : index
      %c0_66 = arith.constant 0 : index
      %82 = vector.load %arg2[%c0_64, %81, %c0_65, %c0_66] : memref<1x16x18x4xbf16, #tpu.memory_space<vmem>>, vector<1x1x18x4xbf16>
      %83 = vector.shape_cast %82 : vector<1x1x18x4xbf16> to vector<1x18x4xbf16>
      %c9 = arith.constant 9 : index
      %c0_67 = arith.constant 0 : index
      %c0_68 = arith.constant 0 : index
      %84 = vector.load %arg6[%c9, %c0_67, %c0_68] : memref<10x18x4xbf16, #tpu.memory_space<vmem>>, vector<1x18x4xbf16>
      tpu.vector_store %arg6[%c9, %c0_67, %c0_68], %83 {strides = array<i32>} : memref<10x18x4xbf16, #tpu.memory_space<vmem>>, vector<1x18x4xbf16>,
    } else {
    }
    %c0_10 = arith.constant 0 : index
    %c0_11 = arith.constant 0 : index
    %c0_12 = arith.constant 0 : index
    %19 = vector.load %arg6[%c0_10, %c0_11, %c0_12] : memref<10x18x4xbf16, #tpu.memory_space<vmem>>, vector<10x18x4xbf16>
    %20 = vector.extract_strided_slice %19 {offsets = [0, 0, 0], sizes = [8, 16, 4], strides = [1, 1, 1]} : vector<10x18x4xbf16> to vector<8x16x4xbf16>
    %21 = vector.shape_cast %20 : vector<8x16x4xbf16> to vector<128x4xbf16>
    %c0_13 = arith.constant 0 : index
    %c0_14 = arith.constant 0 : index
    %c0_15 = arith.constant 0 : index
    %c0_16 = arith.constant 0 : index
    %22 = vector.load %arg3[%c0_13, %c0_14, %c0_15, %c0_16] : memref<3x3x4x128xbf16, #tpu.memory_space<vmem>>, vector<1x1x4x128xbf16>
    %23 = vector.shape_cast %22 : vector<1x1x4x128xbf16> to vector<4x128xbf16>
    %cst_17 = arith.constant dense<0.000000e+00> : vector<128x128xf32>
    %24 = tpu.matmul %21, %23, %cst_17 {dimension_numbers = #tpu.dot_dimension_numbers<[1], [0], [0], [1], [0, 0, 1, 1], [], []>} : vector<128x4xbf16>, vector<4x128xbf16>, vector<128x128xf32> -> vector<128x128xf32>
    %25 = vector.extract_strided_slice %19 {offsets = [0, 1, 0], sizes = [8, 16, 4], strides = [1, 1, 1]} : vector<10x18x4xbf16> to vector<8x16x4xbf16>
    %26 = vector.shape_cast %25 : vector<8x16x4xbf16> to vector<128x4xbf16>
    %c0_18 = arith.constant 0 : index
    %c1_19 = arith.constant 1 : index
    %c0_20 = arith.constant 0 : index
    %c0_21 = arith.constant 0 : index
    %27 = vector.load %arg3[%c0_18, %c1_19, %c0_20, %c0_21] : memref<3x3x4x128xbf16, #tpu.memory_space<vmem>>, vector<1x1x4x128xbf16>
    %28 = vector.shape_cast %27 : vector<1x1x4x128xbf16> to vector<4x128xbf16>
    %cst_22 = arith.constant dense<0.000000e+00> : vector<128x128xf32>
    %29 = tpu.matmul %26, %28, %cst_22 {dimension_numbers = #tpu.dot_dimension_numbers<[1], [0], [0], [1], [0, 0, 1, 1], [], []>} : vector<128x4xbf16>, vector<4x128xbf16>, vector<128x128xf32> -> vector<128x128xf32>
    %30 = arith.addf %24, %29 : vector<128x128xf32>
    %31 = vector.extract_strided_slice %19 {offsets = [0, 2, 0], sizes = [8, 16, 4], strides = [1, 1, 1]} : vector<10x18x4xbf16> to vector<8x16x4xbf16>
    %32 = vector.shape_cast %31 : vector<8x16x4xbf16> to vector<128x4xbf16>
    %c0_23 = arith.constant 0 : index
    %c2 = arith.constant 2 : index
    %c0_24 = arith.constant 0 : index
    %c0_25 = arith.constant 0 : index
    %33 = vector.load %arg3[%c0_23, %c2, %c0_24, %c0_25] : memref<3x3x4x128xbf16, #tpu.memory_space<vmem>>, vector<1x1x4x128xbf16>
    %34 = vector.shape_cast %33 : vector<1x1x4x128xbf16> to vector<4x128xbf16>
    %cst_26 = arith.constant dense<0.000000e+00> : vector<128x128xf32>
    %35 = tpu.matmul %32, %34, %cst_26 {dimension_numbers = #tpu.dot_dimension_numbers<[1], [0], [0], [1], [0, 0, 1, 1], [], []>} : vector<128x4xbf16>, vector<4x128xbf16>, vector<128x128xf32> -> vector<128x128xf32>
    %36 = arith.addf %30, %35 : vector<128x128xf32>
    %37 = vector.extract_strided_slice %19 {offsets = [1, 0, 0], sizes = [8, 16, 4], strides = [1, 1, 1]} : vector<10x18x4xbf16> to vector<8x16x4xbf16>
    %38 = vector.shape_cast %37 : vector<8x16x4xbf16> to vector<128x4xbf16>
    %c1_27 = arith.constant 1 : index
    %c0_28 = arith.constant 0 : index
    %c0_29 = arith.constant 0 : index
    %c0_30 = arith.constant 0 : index
    %39 = vector.load %arg3[%c1_27, %c0_28, %c0_29, %c0_30] : memref<3x3x4x128xbf16, #tpu.memory_space<vmem>>, vector<1x1x4x128xbf16>
    %40 = vector.shape_cast %39 : vector<1x1x4x128xbf16> to vector<4x128xbf16>
    %cst_31 = arith.constant dense<0.000000e+00> : vector<128x128xf32>
    %41 = tpu.matmul %38, %40, %cst_31 {dimension_numbers = #tpu.dot_dimension_numbers<[1], [0], [0], [1], [0, 0, 1, 1], [], []>} : vector<128x4xbf16>, vector<4x128xbf16>, vector<128x128xf32> -> vector<128x128xf32>
    %42 = arith.addf %36, %41 : vector<128x128xf32>
    %43 = vector.extract_strided_slice %19 {offsets = [1, 1, 0], sizes = [8, 16, 4], strides = [1, 1, 1]} : vector<10x18x4xbf16> to vector<8x16x4xbf16>
    %44 = vector.shape_cast %43 : vector<8x16x4xbf16> to vector<128x4xbf16>
    %c1_32 = arith.constant 1 : index
    %c1_33 = arith.constant 1 : index
    %c0_34 = arith.constant 0 : index
    %c0_35 = arith.constant 0 : index
    %45 = vector.load %arg3[%c1_32, %c1_33, %c0_34, %c0_35] : memref<3x3x4x128xbf16, #tpu.memory_space<vmem>>, vector<1x1x4x128xbf16>
    %46 = vector.shape_cast %45 : vector<1x1x4x128xbf16> to vector<4x128xbf16>
    %cst_36 = arith.constant dense<0.000000e+00> : vector<128x128xf32>
    %47 = tpu.matmul %44, %46, %cst_36 {dimension_numbers = #tpu.dot_dimension_numbers<[1], [0], [0], [1], [0, 0, 1, 1], [], []>} : vector<128x4xbf16>, vector<4x128xbf16>, vector<128x128xf32> -> vector<128x128xf32>
    %48 = arith.addf %42, %47 : vector<128x128xf32>
    %49 = vector.extract_strided_slice %19 {offsets = [1, 2, 0], sizes = [8, 16, 4], strides = [1, 1, 1]} : vector<10x18x4xbf16> to vector<8x16x4xbf16>
    %50 = vector.shape_cast %49 : vector<8x16x4xbf16> to vector<128x4xbf16>
    %c1_37 = arith.constant 1 : index
    %c2_38 = arith.constant 2 : index
    %c0_39 = arith.constant 0 : index
    %c0_40 = arith.constant 0 : index
    %51 = vector.load %arg3[%c1_37, %c2_38, %c0_39, %c0_40] : memref<3x3x4x128xbf16, #tpu.memory_space<vmem>>, vector<1x1x4x128xbf16>
    %52 = vector.shape_cast %51 : vector<1x1x4x128xbf16> to vector<4x128xbf16>
    %cst_41 = arith.constant dense<0.000000e+00> : vector<128x128xf32>
    %53 = tpu.matmul %50, %52, %cst_41 {dimension_numbers = #tpu.dot_dimension_numbers<[1], [0], [0], [1], [0, 0, 1, 1], [], []>} : vector<128x4xbf16>, vector<4x128xbf16>, vector<128x128xf32> -> vector<128x128xf32>
    %54 = arith.addf %48, %53 : vector<128x128xf32>
    %55 = vector.extract_strided_slice %19 {offsets = [2, 0, 0], sizes = [8, 16, 4], strides = [1, 1, 1]} : vector<10x18x4xbf16> to vector<8x16x4xbf16>
    %56 = vector.shape_cast %55 : vector<8x16x4xbf16> to vector<128x4xbf16>
    %c2_42 = arith.constant 2 : index
    %c0_43 = arith.constant 0 : index
    %c0_44 = arith.constant 0 : index
    %c0_45 = arith.constant 0 : index
    %57 = vector.load %arg3[%c2_42, %c0_43, %c0_44, %c0_45] : memref<3x3x4x128xbf16, #tpu.memory_space<vmem>>, vector<1x1x4x128xbf16>
    %58 = vector.shape_cast %57 : vector<1x1x4x128xbf16> to vector<4x128xbf16>
    %cst_46 = arith.constant dense<0.000000e+00> : vector<128x128xf32>
    %59 = tpu.matmul %56, %58, %cst_46 {dimension_numbers = #tpu.dot_dimension_numbers<[1], [0], [0], [1], [0, 0, 1, 1], [], []>} : vector<128x4xbf16>, vector<4x128xbf16>, vector<128x128xf32> -> vector<128x128xf32>
    %60 = arith.addf %54, %59 : vector<128x128xf32>
    %61 = vector.extract_strided_slice %19 {offsets = [2, 1, 0], sizes = [8, 16, 4], strides = [1, 1, 1]} : vector<10x18x4xbf16> to vector<8x16x4xbf16>
    %62 = vector.shape_cast %61 : vector<8x16x4xbf16> to vector<128x4xbf16>
    %c2_47 = arith.constant 2 : index
    %c1_48 = arith.constant 1 : index
    %c0_49 = arith.constant 0 : index
    %c0_50 = arith.constant 0 : index
    %63 = vector.load %arg3[%c2_47, %c1_48, %c0_49, %c0_50] : memref<3x3x4x128xbf16, #tpu.memory_space<vmem>>, vector<1x1x4x128xbf16>
    %64 = vector.shape_cast %63 : vector<1x1x4x128xbf16> to vector<4x128xbf16>
    %cst_51 = arith.constant dense<0.000000e+00> : vector<128x128xf32>
    %65 = tpu.matmul %62, %64, %cst_51 {dimension_numbers = #tpu.dot_dimension_numbers<[1], [0], [0], [1], [0, 0, 1, 1], [], []>} : vector<128x4xbf16>, vector<4x128xbf16>, vector<128x128xf32> -> vector<128x128xf32>
    %66 = arith.addf %60, %65 : vector<128x128xf32>
    %67 = vector.extract_strided_slice %19 {offsets = [2, 2, 0], sizes = [8, 16, 4], strides = [1, 1, 1]} : vector<10x18x4xbf16> to vector<8x16x4xbf16>
    %68 = vector.shape_cast %67 : vector<8x16x4xbf16> to vector<128x4xbf16>
    %c2_52 = arith.constant 2 : index
    %c2_53 = arith.constant 2 : index
    %c0_54 = arith.constant 0 : index
    %c0_55 = arith.constant 0 : index
    %69 = vector.load %arg3[%c2_52, %c2_53, %c0_54, %c0_55] : memref<3x3x4x128xbf16, #tpu.memory_space<vmem>>, vector<1x1x4x128xbf16>
    %70 = vector.shape_cast %69 : vector<1x1x4x128xbf16> to vector<4x128xbf16>
    %cst_56 = arith.constant dense<0.000000e+00> : vector<128x128xf32>
    %71 = tpu.matmul %68, %70, %cst_56 {dimension_numbers = #tpu.dot_dimension_numbers<[1], [0], [0], [1], [0, 0, 1, 1], [], []>} : vector<128x4xbf16>, vector<4x128xbf16>, vector<128x128xf32> -> vector<128x128xf32>
    %72 = arith.addf %66, %71 : vector<128x128xf32>
    %c0_57 = arith.constant 0 : index
    %c0_58 = arith.constant 0 : index
    %73 = vector.load %arg4[%c0_57, %c0_58] : memref<1x128xf32, #tpu.memory_space<vmem>>, vector<1x128xf32>
    %74 = vector.broadcast %73 : vector<1x128xf32> to vector<128x128xf32>
    %75 = arith.addf %72, %74 : vector<128x128xf32>
    %76 = vector.shape_cast %75 : vector<128x128xf32> to vector<8x16x128xf32>
    %c0_59 = arith.constant 0 : index
    %c0_60 = arith.constant 0 : index
    %c0_61 = arith.constant 0 : index
    %c0_62 = arith.constant 0 : index
    %77 = vector.load %arg5[%c0_59, %c0_60, %c0_61, %c0_62] : memref<1x8x16x128xf32, #tpu.memory_space<vmem>>, vector<1x8x16x128xf32>
    %78 = vector.shape_cast %77 : vector<1x8x16x128xf32> to vector<8x16x128xf32>
    %79 = vector.shape_cast %76 : vector<8x16x128xf32> to vector<1x8x16x128xf32>
    tpu.vector_store %arg5[%c0_59, %c0_60, %c0_61, %c0_62], %79 {strides = array<i32>} : memref<1x8x16x128xf32, #tpu.memory_space<vmem>>, vector<1x8x16x128xf32>,
    return
  }
  func.func @transform_0(%arg0: i32, %arg1: i32) -> (i32, i32, i32, i32) {
    %c0_i32 = arith.constant 0 : i32
    %c0_i32_0 = arith.constant 0 : i32
    %c0_i32_1 = arith.constant 0 : i32
    %c0_i32_2 = arith.constant 0 : i32
    return %arg0, %c0_i32, %c0_i32_0, %c0_i32_1 : i32, i32, i32, i32
  }
  func.func @transform_1(%arg0: i32, %arg1: i32) -> (i32, i32, i32, i32) {
    %c0_i32 = arith.constant 0 : i32
    %c0_i32_0 = arith.constant 0 : i32
    %c0_i32_1 = arith.constant 0 : i32
    %c0_i32_2 = arith.constant 0 : i32
    %c0_i32_3 = arith.constant 0 : i32
    return %c0_i32, %c0_i32_0, %c0_i32_1, %c0_i32_2 : i32, i32, i32, i32
  }
  func.func @transform_2(%arg0: i32, %arg1: i32) -> (i32, i32) {
    %c0_i32 = arith.constant 0 : i32
    %c0_i32_0 = arith.constant 0 : i32
    %c0_i32_1 = arith.constant 0 : i32
    return %c0_i32, %c0_i32_0 : i32, i32
  }
  func.func @transform_3(%arg0: i32, %arg1: i32) -> (i32, i32, i32, i32) {
    %c0_i32 = arith.constant 0 : i32
    %c0_i32_0 = arith.constant 0 : i32
    %c0_i32_1 = arith.constant 0 : i32
    return %arg0, %arg1, %c0_i32, %c0_i32_0 : i32, i32, i32, i32
  }
}

</mosaic_0001>

<bundles_post_ra>
// kernel: acblock_forward.1
= control target key start
LH: loop header
LB: loop body
LE: loop exit
PB: predicated region body
PF: predicated region fallthrough
CT: control target
= control target key end

     0   :  { %s1862_s12 = smov 0   ;;  %s1864_s13 = smov 0   ;;  %s2557_s0 = inlined_call_operand.vmem [shape: bf16[2,16,18,4], index: 0, kind: input, shape index: {}]   ;;  %s2558_s1 = inlined_call_operand.vmem [shape: bf16[3,3,4,128], index: 1, kind: input, shape index: {}]   ;;  %s2559_s2 = inlined_call_operand.vmem [shape: f32[1,128], index: 2, kind: input, shape index: {}]   ;;  %s2560_s3 = inlined_call_operand.vmem [shape: f32[2,16,16,128], index: 3, kind: output, shape index: {}]  }
   0x1   :  { %s1866_s14 = smov 0   ;;  %s1868_s15 = smov 0  }
   0x2   :  { %s1870_s16 = smov 0  }
   0x3 LB: > { %s22_s17 = sadd.s32 1, %s1830_s14  ;;  %s25_s18 = sadd.s32 1, %s1834_s15  ;;  %s1838_s16 = sphi %s1870_s16, %s13_s16   ;;  %s1834_s15 = sphi %s1868_s15, %s2568_s15   ;;  %s1830_s14 = sphi %s1866_s14, %s2567_s14   ;;  %s1826_s13 = sphi %s1864_s13, %s2566_s13   ;;  %s1822_s12 = sphi %s1862_s12, %s2565_s12  }
   0x4   : > { %p23_p0 = scmp.ge.s32.totalorder %s22_s17, 2  ;;  %p1589_p1 = scmp.ge.s32.totalorder %s1838_s16, 1 }
   0x5   : > { %p151_p2 = scmp.lt.s32.totalorder %s1838_s16, 5 }
   0x6   : > { %s2570_s17 = smov (%p23_p0, %s22_s17), 0  ;;  %s2572_s18 = smov (!%p23_p0, %s25_s18), %s1834_s15 }
   0x7   : > { %p152_p3 = pnand %p1589_p1, %p151_p2  ;;  %p27_p4 = scmp.ge.s32.totalorder %s2572_s18, 2 }
   0x8   : > { %p180_p5 = scmp.lt.s32.totalorder (!%p152_p3), %s1826_s13, 1  ;;  %s1895_s19 = sshll.u32 (!%p152_p3), %s1822_s12, 3 }
   0x9   : > { %s2574_s18 = smov (%p27_p4, %s2572_s18), 0  ;;  %155 = sbr.rel (%p152_p3) target bundleno = 529 (0x211), region = 32 }
   0xa   : > { %p188_p6 = scmp.lt.s32.totalorder (!%p152_p3), %s1895_s19, 15  ;;  %s1741_s20 = smul.u32 (!%p152_p3), 96, %s1822_s12 }
   0xb   : > { %p1598_p7 = scmp.ne.s32.totalorder (!%p152_p3), %s1822_s12, 0 }
   0xe   : > { %s2576_s13 = smov (!%p180_p5, %s1826_s13), 1  ;;  %vm226_vm0 = vcmask 27648   ;;  %vm229_vm1 = vcmask 24576  }
   0xf   : > { %s189_s21 = scalar_select %p188_p6, %s1895_s19, 15 }
  0x10   : > { %s1756_s22 = smul.u32 192, %s2576_s13  ;;  %s1593_s23 = sshll.u32 %s2576_s13, 5 }
  0x11   : > { %s1592_s24 = sshll.u32 %s189_s21, 1 }
  0x12   : > { %s1903_s27 = scalar_lea.vmem %s2557_s0, %s1756_s22  ;;  %s192_s28 = sadd.s32 %s1593_s23, %s1592_s24 }
  0x13   : > { %s1594_s29 = sshll.u32 %s192_s28, 3  ;;  %s1906_s30 = scalar_lea.vmem %s1903_s27, %s1741_s20 }
  0x14   : > { %s1911_s6 = scalar_lea.vmem %s2560_s3, %s1594_s29  ;;  %v201_v0 = vld [vmem:[%s1906_s30] sm:$0xf]  ;;  %v202_v1 = vld [vmem:[%s1906_s30 + $0x4] sm:$0xf]  ;;  %v203_v2 = vld [vmem:[%s1906_s30 + $0x8] sm:$0x1] }
  0x15   : > { %227 = vst.msk [vmem:[#allocation2 + $0xc] sm:$0xf] %vm226_vm0, %v201_v0  ;;  %v204_v3 = vld [vmem:[%s1906_s30 + $0xc] sm:$0xf]  ;;  %v205_v4 = vld [vmem:[%s1906_s30 + $0x10] sm:$0xf] }
  0x16   : > { %228 = vst.msk [vmem:[#allocation2 + $0x10] sm:$0xf] %vm226_vm0, %v202_v1  ;;  %v206_v5 = vld [vmem:[%s1906_s30 + $0x14] sm:$0x1]  ;;  %v207_v6 = vld [vmem:[%s1906_s30 + $0x18] sm:$0xf] }
  0x17   : > { %230 = vst.msk [vmem:[#allocation2 + $0x14] sm:$0x1] %vm229_vm1, %v203_v2  ;;  %v208_v7 = vld [vmem:[%s1906_s30 + $0x1c] sm:$0xf]  ;;  %v209_v8 = vld [vmem:[%s1906_s30 + $0x20] sm:$0x1] }
  0x18   : > { %231 = vst.msk [vmem:[#allocation2 + $0x18] sm:$0xf] %vm226_vm0, %v204_v3  ;;  %v210_v9 = vld [vmem:[%s1906_s30 + $0x24] sm:$0xf]  ;;  %v211_v10 = vld [vmem:[%s1906_s30 + $0x28] sm:$0xf] }
  0x19   : > { %232 = vst.msk [vmem:[#allocation2 + $0x1c] sm:$0xf] %vm226_vm0, %v205_v4  ;;  %v212_v11 = vld [vmem:[%s1906_s30 + $0x2c] sm:$0x1]  ;;  %v213_v12 = vld [vmem:[%s1906_s30 + $0x30] sm:$0xf] }
  0x1a   : > { %233 = vst.msk [vmem:[#allocation2 + $0x20] sm:$0x1] %vm229_vm1, %v206_v5  ;;  %v214_v13 = vld [vmem:[%s1906_s30 + $0x34] sm:$0xf]  ;;  %v215_v14 = vld [vmem:[%s1906_s30 + $0x38] sm:$0x1] }
  0x1b   : > { %234 = vst.msk [vmem:[#allocation2 + $0x24] sm:$0xf] %vm226_vm0, %v207_v6  ;;  %v216_v15 = vld [vmem:[%s1906_s30 + $0x3c] sm:$0xf]  ;;  %v217_v16 = vld [vmem:[%s1906_s30 + $0x40] sm:$0xf] }
  0x1c   : > { %235 = vst.msk [vmem:[#allocation2 + $0x28] sm:$0xf] %vm226_vm0, %v208_v7  ;;  %v218_v17 = vld [vmem:[%s1906_s30 + $0x44] sm:$0x1]  ;;  %v219_v18 = vld [vmem:[%s1906_s30 + $0x48] sm:$0xf] }
  0x1d   : > { %236 = vst.msk [vmem:[#allocation2 + $0x2c] sm:$0x1] %vm229_vm1, %v209_v8  ;;  %v220_v19 = vld [vmem:[%s1906_s30 + $0x4c] sm:$0xf]  ;;  %v221_v20 = vld [vmem:[%s1906_s30 + $0x50] sm:$0x1] }
  0x1e   : > { %237 = vst.msk [vmem:[#allocation2 + $0x30] sm:$0xf] %vm226_vm0, %v210_v9  ;;  %v222_v21 = vld [vmem:[%s1906_s30 + $0x54] sm:$0xf]  ;;  %v223_v22 = vld [vmem:[%s1906_s30 + $0x58] sm:$0xf] }
  0x1f   : > { %238 = vst.msk [vmem:[#allocation2 + $0x34] sm:$0xf] %vm226_vm0, %v211_v10  ;;  %v224_v23 = vld [vmem:[%s1906_s30 + $0x5c] sm:$0x1] }
  0x20   : > { %239 = vst.msk [vmem:[#allocation2 + $0x38] sm:$0x1] %vm229_vm1, %v212_v11 }
  0x21   : > { %240 = vst.msk [vmem:[#allocation2 + $0x3c] sm:$0xf] %vm226_vm0, %v213_v12 }
  0x22   : > { %241 = vst.msk [vmem:[#allocation2 + $0x40] sm:$0xf] %vm226_vm0, %v214_v13 }
  0x23   : > { %242 = vst.msk [vmem:[#allocation2 + $0x44] sm:$0x1] %vm229_vm1, %v215_v14 }
  0x24   : > { %243 = vst.msk [vmem:[#allocation2 + $0x48] sm:$0xf] %vm226_vm0, %v216_v15 }
  0x25   : > { %244 = vst.msk [vmem:[#allocation2 + $0x4c] sm:$0xf] %vm226_vm0, %v217_v16 }
  0x26   : > { %245 = vst.msk [vmem:[#allocation2 + $0x50] sm:$0x1] %vm229_vm1, %v218_v17 }
  0x27   : > { %246 = vst.msk [vmem:[#allocation2 + $0x54] sm:$0xf] %vm226_vm0, %v219_v18 }
  0x28   : > { %247 = vst.msk [vmem:[#allocation2 + $0x58] sm:$0xf] %vm226_vm0, %v220_v19  ;;  %255 = sbr.rel (%p1598_p7) target bundleno = 49 (0x31), region = 36 }
  0x29   : > { %248 = vst.msk [vmem:[#allocation2 + $0x5c] sm:$0x1] %vm229_vm1, %v221_v20 }
  0x2a   : > { %249 = vst.msk [vmem:[#allocation2 + $0x60] sm:$0xf] %vm226_vm0, %v222_v21 }
  0x2b   : > { %250 = vst.msk [vmem:[#allocation2 + $0x64] sm:$0xf] %vm226_vm0, %v223_v22 }
  0x2c   : > { %251 = vst.msk [vmem:[#allocation2 + $0x68] sm:$0x1] %vm229_vm1, %v224_v23 }
  0x2d   : > { %v1840_v24 = vmov 0  }
  0x2e   : > { %256 = vst.msk [vmem:[#allocation2] sm:$0xf] %vm226_vm0, %v1840_v24 }
  0x2f   : > { %257 = vst.msk [vmem:[#allocation2 + $0x4] sm:$0xf] %vm226_vm0, %v1840_v24 }
  0x30   : > { %258 = vst.msk [vmem:[#allocation2 + $0x8] sm:$0x1] %vm229_vm1, %v1840_v24 }
  0x31 PF: > { %p1599_p8 = scmp.le.s32.totalorder %s1822_s12, 0 }
  0x32   : > { %s1600_s7 = sadd.s32 (!%p1599_p8), 4294967295, %s1895_s19 }
  0x33   : > { %262 = sbr.rel (%p1599_p8) target bundleno = 60 (0x3c), region = 40 }
  0x34   : > { %s1742_s8 = smul.u32 (!%p1599_p8), 12, %s1600_s7 }
  0x36   : > { %s266_s9 = scalar_lea.vmem (!%p1599_p8), %s1903_s27, %s1742_s8 }
  0x38   : > { %v267_v25 = vld [vmem:[%s266_s9] sm:$0xf]  ;;  %v268_v26 = vld [vmem:[%s266_s9 + $0x4] sm:$0xf]  ;;  %v269_v27 = vld [vmem:[%s266_s9 + $0x8] sm:$0x1] }
  0x39   : > { %270 = vst.msk [vmem:[#allocation2] sm:$0xf] %vm226_vm0, %v267_v25 }
  0x3a   : > { %271 = vst.msk [vmem:[#allocation2 + $0x4] sm:$0xf] %vm226_vm0, %v268_v26 }
  0x3b   : > { %272 = vst.msk [vmem:[#allocation2 + $0x8] sm:$0x1] %vm229_vm1, %v269_v27 }
  0x3c PF: > { %p1602_p9 = scmp.ne.s32.totalorder %s1822_s12, 1 }
  0x3e   : > { %276 = sbr.rel (%p1602_p9) target bundleno = 71 (0x47), region = 44 }
  0x43   : > { %v1841_v28 = vmov 0  }
  0x44   : > { %278 = vst.msk [vmem:[#allocation2 + $0x6c] sm:$0xf] %vm226_vm0, %v1841_v28 }
  0x45   : > { %279 = vst.msk [vmem:[#allocation2 + $0x70] sm:$0xf] %vm226_vm0, %v1841_v28 }
  0x46   : > { %280 = vst.msk [vmem:[#allocation2 + $0x74] sm:$0x1] %vm229_vm1, %v1841_v28 }
  0x47 PF: > { %p1603_p10 = scmp.ge.s32.totalorder %s1822_s12, 1 }
  0x49   : > { %284 = sbr.rel (%p1603_p10) target bundleno = 82 (0x52), region = 48 }
  0x4e   : > { %v1606_v29 = vld [vmem:[%s1906_s30 + $0x60] sm:$0xf]  ;;  %v1607_v30 = vld [vmem:[%s1906_s30 + $0x64] sm:$0xf]  ;;  %v1608_v31 = vld [vmem:[%s1906_s30 + $0x68] sm:$0x1] }
  0x4f   : > { %293 = vst.msk [vmem:[#allocation2 + $0x6c] sm:$0xf] %vm226_vm0, %v1606_v29 }
  0x50   : > { %294 = vst.msk [vmem:[#allocation2 + $0x70] sm:$0xf] %vm226_vm0, %v1607_v30 }
  0x51   : > { %295 = vst.msk [vmem:[#allocation2 + $0x74] sm:$0x1] %vm229_vm1, %v1608_v31 }
  0x52 PF: > { %v1609_v32 = vld [vmem:[%s2558_s1 + $0x2] sm:$0x3]  ;;  %vm573_vm2 = vcmask 1041408   ;;  %v1985_v33 = vld [vmem:[#allocation2 + $0x18] sm:$0xf]  ;;  %vm548_vm5 = vcmask 31744  }
  0x53   : > { %v575_v34 = vsel %vm573_vm2, %v1609_v32, 0  ;;  %v1988_v35 = vld [vmem:[#allocation2 + $0x1c] sm:$0xf]  ;;  %v1990_v36 = vld [vmem:[#allocation2 + $0x20] sm:$0x1]  ;;  %v379_v37 = vshrl.u32 %v1985_v33, 16 }
  0x54   : > { %1753 = vmatpush.bf16.msra.mxu1 %v575_v34  ;;  %1754 = vmatpush.bf16.msra.mxu2 %v575_v34  ;;  %vm327_vm3 = vsmask.f32 3328  ;;  %vm328_vm4 = vsmask.f32 7440  ;;  %v382_v38 = vshll.u32 %v1985_v33, 16  ;;  %v388_v39 = vshll.u32 %v1988_v35, 16 }
  0x55   : > { %1755 = vmatpush.bf16.msra.mxu3 %v575_v34  ;;  %584 = vmatpush.bf16.msra.mxu0 %v575_v34  ;;  %v381_v40 = vrot.slane %v379_v37, 4  ;;  %v392_v41 = vshrl.u32 %v1988_v35, 16  ;;  %v398_v42 = vshll.u32 %v1990_v36, 16  ;;  %v1997_v43 = vld [vmem:[#allocation2 + $0x30] sm:$0xf]  ;;  %vm2012_vm6 = vmor %vm327_vm3, %vm328_vm4  ;;  %vm750_vm7 = vcmask 1042432  }
  0x56   : > { %v384_v44 = vrot.slane %v382_v38, 5  ;;  %v390_v45 = vrot.slane %v388_v39, 5  ;;  %v1999_v46 = vld [vmem:[#allocation2 + $0x34] sm:$0xf]  ;;  %v2001_v47 = vld [vmem:[#allocation2 + $0x38] sm:$0x1] }
  0x57   : > { %v394_v48 = vrot.slane %v392_v41, 4  ;;  %v400_v49 = vrot.slane %v398_v42, 5  ;;  %v427_v50 = vshrl.u32 %v1997_v43, 16  ;;  %v430_v51 = vshll.u32 %v1997_v43, 16  ;;  %v2005_v52 = vld [vmem:[#allocation2 + $0x48] sm:$0xf] }
  0x58   : > { %v385_v53 = vor.u32 %v384_v44, %v381_v40  ;;  %v436_v54 = vshll.u32 %v1999_v46, 16  ;;  %v440_v55 = vshrl.u32 %v1999_v46, 16  ;;  %v446_v56 = vshll.u32 %v2001_v47, 16  ;;  %v2016_v61 = vld [vmem:[#allocation2 + $0x4c] sm:$0xf] }
  0x59   : > { %v395_v58 = vor.u32 %v394_v48, %v390_v45  ;;  %v429_v59 = vrot.slane %v427_v50, 4  ;;  %v432_v60 = vrot.slane %v430_v51, 5  ;;  %v475_v62 = vshrl.u32 %v2005_v52, 16  ;;  %v2022_v9 = vld [vmem:[#allocation2 + $0x50] sm:$0x1] }
  0x5a   : > { %v386_v63 = vrot.slane %v385_v53, 4  ;;  %v438_v0 = vrot.slane %v436_v54, 5  ;;  %v442_v1 = vrot.slane %v440_v55, 4  ;;  %v448_v2 = vrot.slane %v446_v56, 5  ;;  %v1666_v12 = vld [vmem:[%s2558_s1 + $0x4] sm:$0x3] }
  0x5b   : > { %v396_v3 = vrot.slane %v395_v58, 4  ;;  %v433_v4 = vor.u32 %v432_v60, %v429_v59  ;;  %v477_v5 = vrot.slane %v475_v62, 4  ;;  %v478_v6 = vshll.u32 %v2005_v52, 16  ;;  %v2031_v21 = vld [vmem:[#allocation2] sm:$0xf] }
  0x5c   : > { %v391_v7 = vsel %vm2012_vm6, %v386_v63, %v390_v45  ;;  %v443_v8 = vor.u32 %v442_v1, %v438_v0  ;;  %v484_v10 = vshll.u32 %v2016_v61, 16  ;;  %v488_v11 = vshrl.u32 %v2016_v61, 16  ;;  %v2037_v26 = vld [vmem:[#allocation2 + $0x4] sm:$0xf]  ;;  %v2043_v31 = vld [vmem:[#allocation2 + $0x8] sm:$0x1] }
  0x5d   : > { %v401_v13 = vsel %vm2012_vm6, %v396_v3, %v400_v49  ;;  %v528_v14 = vunpack.c.l.b16 %v391_v7  ;;  %v434_v15 = vrot.slane %v433_v4, 4  ;;  %v480_v16 = vrot.slane %v478_v6, 5  ;;  %v1675_v39 = vld [vmem:[%s2558_s1 + $0x6] sm:$0x3]  ;;  %v326_v45 = vld [vmem:[%s2558_s1] sm:$0x3] }
  0x5e   : > { %v529_v17 = vunpack.c.l.b16 %v401_v13  ;;  %v444_v18 = vrot.slane %v443_v8, 4  ;;  %v486_v19 = vrot.slane %v484_v10, 5  ;;  %v490_v20 = vrot.slane %v488_v11, 4  ;;  %v1688_v53 = vld [vmem:[%s2558_s1 + $0x8] sm:$0x3] }
  0x5f   : > { %v439_v22 = vsel %vm2012_vm6, %v434_v15, %v438_v0  ;;  %v481_v23 = vor.u32 %v480_v16, %v477_v5  ;;  %v494_v24 = vshll.u32 %v2022_v9, 16  ;;  %v860_v25 = vsel %vm573_vm2, %v1666_v12, 0  ;;  %v2065_v54 = vld [vmem:[#allocation2 + $0x24] sm:$0xf]  ;;  %v2069_v60 = vld [vmem:[#allocation2 + $0x28] sm:$0xf] }
  0x60   : > { %v2039_v27 = vpack.c.b16 %v529_v17, %v528_v14  ;;  %v449_v28 = vsel %vm2012_vm6, %v444_v18, %v448_v2  ;;  %v532_v29 = vunpack.c.l.b16 %v439_v22  ;;  %v491_v30 = vor.u32 %v490_v20, %v486_v19  ;;  %869 = vmatpush.bf16.msrb.mxu2 %v860_v25  ;;  %v2071_v62 = vld [vmem:[#allocation2 + $0x2c] sm:$0x1]  ;;  %v2076_v3 = vld [vmem:[#allocation2 + $0x3c] sm:$0xf]  ;;  %v2088_v17 = vld [vmem:[#allocation2 + $0x40] sm:$0xf] }
  0x61   : > { %v533_v32 = vunpack.c.l.b16 %v449_v28  ;;  %v482_v34 = vrot.slane %v481_v23, 4  ;;  %v496_v37 = vrot.slane %v494_v24, 5  ;;  %v331_v38 = vshrl.u32 %v2031_v21, 16  ;;  %v2092_v22 = vld [vmem:[#allocation2 + $0x44] sm:$0x1] }
  0x62   : > { %1612 = vmatmul.msk.bf16.vlgmr.msra.gmra.mxu1 %vm548_vm5, %v2039_v27  ;;  %v492_v40 = vrot.slane %v491_v30, 4  ;;  %v334_v41 = vshll.u32 %v2031_v21, 16  ;;  %v340_v42 = vshll.u32 %v2037_v26, 16  ;;  %v344_v44 = vshrl.u32 %v2037_v26, 16  ;;  %v2097_v30 = vld [vmem:[#allocation2 + $0x54] sm:$0xf] }
  0x63   : > { %v2057_v48 = vpack.c.b16 %v533_v32, %v532_v29  ;;  %v487_v49 = vsel %vm2012_vm6, %v482_v34, %v486_v19  ;;  %v333_v50 = vrot.slane %v331_v38, 4  ;;  %v350_v51 = vshll.u32 %v2043_v31, 16 }
  0x64   : > { %v497_v55 = vsel %vm2012_vm6, %v492_v40, %v496_v37  ;;  %v536_v56 = vunpack.c.l.b16 %v487_v49  ;;  %v336_v58 = vrot.slane %v334_v41, 5  ;;  %v342_v59 = vrot.slane %v340_v42, 5 }
  0x65   : > { %1614 = vmatmul.msk.bf16.vlgmr.msra.gmra.mxu2 %vm548_vm5, %v2057_v48  ;;  %v537_v63 = vunpack.c.l.b16 %v497_v55  ;;  %v346_v0 = vrot.slane %v344_v44, 4  ;;  %v352_v1 = vrot.slane %v350_v51, 5  ;;  %v758_v2 = vrot.slane %v2043_v31, 5 }
  0x66   : > { %v337_v4 = vor.u32 %v336_v58, %v333_v50  ;;  %v938_v5 = vsel %vm573_vm2, %v1675_v39, 0  ;;  %v691_v6 = vsel %vm573_vm2, %v326_v45, 0  ;;  %v1038_v7 = vsel %vm573_vm2, %v1688_v53, 0  ;;  %v2105_v50 = vld [vmem:[#allocation2 + $0x58] sm:$0xf] }
  0x67   : > { %v2081_v8 = vpack.c.b16 %v537_v63, %v536_v56  ;;  %v347_v10 = vor.u32 %v346_v0, %v342_v59  ;;  %947 = vmatpush.bf16.msrb.mxu3 %v938_v5  ;;  %700 = vmatpush.bf16.msrb.mxu1 %v691_v6  ;;  %v403_v11 = vshrl.u32 %v2065_v54, 16  ;;  %v406_v12 = vshll.u32 %v2065_v54, 16  ;;  %v2112_v5 = vld [vmem:[#allocation2 + $0xc] sm:$0xf] }
  0x68   : > { %v338_v13 = vrot.slane %v337_v4, 4  ;;  %1047 = vmatpush.bf16.msrb.mxu0 %v1038_v7  ;;  %v412_v14 = vshll.u32 %v2069_v60, 16  ;;  %v416_v15 = vshrl.u32 %v2069_v60, 16  ;;  %v422_v16 = vshll.u32 %v2071_v62, 16 }
  0x69   : > { %1616 = vmatmul.msk.bf16.vlgmr.msra.gmra.mxu3 %vm548_vm5, %v2081_v8  ;;  %v348_v18 = vrot.slane %v347_v10, 4  ;;  %v405_v19 = vrot.slane %v403_v11, 4  ;;  %v408_v20 = vrot.slane %v406_v12, 5  ;;  %v451_v23 = vshrl.u32 %v2076_v3, 16 }
  0x6a   : > { %v343_v24 = vsel %vm2012_vm6, %v338_v13, %v342_v59  ;;  %v414_v25 = vrot.slane %v412_v14, 5  ;;  %v418_v28 = vrot.slane %v416_v15, 4  ;;  %v424_v29 = vrot.slane %v422_v16, 5  ;;  %v2108_v59 = vld [vmem:[#allocation2 + $0x5c] sm:$0x1] }
  0x6b   : > { %v353_v32 = vsel %vm2012_vm6, %v348_v18, %v352_v1  ;;  %v524_v34 = vunpack.c.l.b16 %v343_v24  ;;  %v409_v37 = vor.u32 %v408_v20, %v405_v19  ;;  %v453_v38 = vrot.slane %v451_v23, 4 }
  0x6c   : > { %v525_v39 = vunpack.c.l.b16 %v353_v32  ;;  %v419_v40 = vor.u32 %v418_v28, %v414_v25  ;;  %v454_v41 = vshll.u32 %v2076_v3, 16  ;;  %v460_v42 = vshll.u32 %v2088_v17, 16 }
  0x6d   : > { %v410_v44 = vrot.slane %v409_v37, 4  ;;  %v464_v45 = vshrl.u32 %v2088_v17, 16  ;;  %v470_v49 = vshll.u32 %v2092_v22, 16  ;;  %v499_v51 = vshrl.u32 %v2097_v30, 16 }
  0x6e   : > { %v540_v53 = vpack.c.b16 %v525_v39, %v524_v34  ;;  %v420_v55 = vrot.slane %v419_v40, 4  ;;  %v456_v56 = vrot.slane %v454_v41, 5  ;;  %v462_v58 = vrot.slane %v460_v42, 5 }
  0x6f   : > { %v415_v63 = vsel %vm2012_vm6, %v410_v44, %v414_v25  ;;  %v466_v0 = vrot.slane %v464_v45, 4  ;;  %v472_v1 = vrot.slane %v470_v49, 5  ;;  %v501_v4 = vrot.slane %v499_v51, 4 }
  0x70   : > { %1610 = vmatmul.msk.bf16.vlgmr.msra.gmra.mxu0 %vm548_vm5, %v540_v53  ;;  %v425_v6 = vsel %vm2012_vm6, %v420_v55, %v424_v29  ;;  %v530_v7 = vunpack.c.l.b16 %v415_v63  ;;  %v457_v10 = vor.u32 %v456_v56, %v453_v38  ;;  %v502_v11 = vshll.u32 %v2097_v30, 16  ;;  %v2124_v29 = vld [vmem:[#allocation2 + $0x10] sm:$0xf]  ;;  %v2128_v38 = vld [vmem:[#allocation2 + $0x14] sm:$0x1] }
  0x71   : > { %v531_v12 = vunpack.c.l.b16 %v425_v6  ;;  %v467_v13 = vor.u32 %v466_v0, %v462_v58  ;;  %v508_v14 = vshll.u32 %v2105_v50, 16  ;;  %v512_v15 = vshrl.u32 %v2105_v50, 16  ;;  %v1707_v6 = vld [vmem:[%s2558_s1 + $0xc] sm:$0x3] }
  0x72   : > { %v458_v16 = vrot.slane %v457_v10, 4  ;;  %v504_v18 = vrot.slane %v502_v11, 5  ;;  %v518_v19 = vshll.u32 %v2108_v59, 16  ;;  %v355_v20 = vshrl.u32 %v2112_v5, 16 }
  0x73   : > { %v2122_v23 = vpack.c.b16 %v531_v12, %v530_v7  ;;  %v468_v24 = vrot.slane %v467_v13, 4  ;;  %v510_v25 = vrot.slane %v508_v14, 5  ;;  %v514_v28 = vrot.slane %v512_v15, 4  ;;  %v1720_v7 = vld [vmem:[%s2558_s1 + $0xe] sm:$0x3] }
  0x74   : > { %v463_v32 = vsel %vm2012_vm6, %v458_v16, %v462_v58  ;;  %v505_v34 = vor.u32 %v504_v18, %v501_v4  ;;  %v520_v37 = vrot.slane %v518_v19, 5  ;;  %v357_v39 = vrot.slane %v355_v20, 4  ;;  %v1698_v14 = vld [vmem:[%s2558_s1 + $0xa] sm:$0x3]  ;;  %v1730_v15 = vld [vmem:[%s2558_s1 + $0x10] sm:$0x3] }
  0x75   : > { %1613 = vmatmul.msk.bf16.gmra.mxu1 %vm548_vm5, %v2122_v23  ;;  %v473_v40 = vsel %vm2012_vm6, %v468_v24, %v472_v1  ;;  %v534_v41 = vunpack.c.l.b16 %v463_v32  ;;  %v515_v42 = vor.u32 %v514_v28, %v510_v25  ;;  %v358_v44 = vshll.u32 %v2112_v5, 16 }
  0x76   : > { %v535_v45 = vunpack.c.l.b16 %v473_v40  ;;  %v506_v49 = vrot.slane %v505_v34, 4  ;;  %v364_v51 = vshll.u32 %v2124_v29, 16  ;;  %v368_v53 = vshrl.u32 %v2124_v29, 16 }
  0x77   : > { %v516_v55 = vrot.slane %v515_v42, 4  ;;  %v360_v56 = vrot.slane %v358_v44, 5  ;;  %v374_v58 = vshll.u32 %v2128_v38, 16  ;;  %vm751_vm8 = vcmask 1046532  }
  0x78   : > { %v2138_v63 = vpack.c.b16 %v535_v45, %v534_v41  ;;  %v511_v0 = vsel %vm2012_vm6, %v506_v49, %v510_v25  ;;  %v366_v1 = vrot.slane %v364_v51, 5  ;;  %v370_v4 = vrot.slane %v368_v53, 4  ;;  %vm2165_vm9 = vmor %vm750_vm7, %vm751_vm8  ;;  %v1743_v53 = vld [vmem:[#allocation2] sm:$0xff] }
  0x79   : > { %v521_v10 = vsel %vm2012_vm6, %v516_v55, %v520_v37  ;;  %v538_v11 = vunpack.c.l.b16 %v511_v0  ;;  %v361_v12 = vor.u32 %v360_v56, %v357_v39  ;;  %v376_v13 = vrot.slane %v374_v58, 5 }
  0x7a   : > { %1615 = vmatmul.msk.bf16.gmra.mxu2 %vm548_vm5, %v2138_v63  ;;  %v539_v16 = vunpack.c.l.b16 %v521_v10  ;;  %v371_v18 = vor.u32 %v370_v4, %v366_v1  ;;  %v1658_v19 = vrot.slane %v2031_v21, 9  ;;  %v755_v24 = vrot.slane %v2037_v26, 5 }
  0x7b   : > { %v362_v20 = vrot.slane %v361_v12, 4  ;;  %v1200_v25 = vsel %vm573_vm2, %v1707_v6, 0  ;;  %v1300_v28 = vsel %vm573_vm2, %v1720_v7, 0  ;;  %v1122_v39 = vsel %vm573_vm2, %v1698_v14, 0 }
  0x7c   : > { %v2162_v32 = vpack.c.b16 %v539_v16, %v538_v11  ;;  %v372_v34 = vrot.slane %v371_v18, 4  ;;  %1209 = vmatpush.bf16.msra.mxu2 %v1200_v25  ;;  %1309 = vmatpush.bf16.msra.mxu3 %v1300_v28  ;;  %v1384_v21 = vsel %vm573_vm2, %v1730_v15, 0  ;;  %v757_v40 = vrot.slane %v755_v24, 4  ;;  %v1744_v11 = vld [vmem:[#allocation2 + $0xc] sm:$0xff] }
  0x7d   : > { %v367_v26 = vsel %vm2012_vm6, %v362_v20, %v366_v1  ;;  %1131 = vmatpush.bf16.msra.mxu1 %v1122_v39  ;;  %1393 = vmatpush.bf16.msra.mxu0 %v1384_v21  ;;  %v756_v45 = vsel %vm2165_vm9, %v1658_v19, %v755_v24  ;;  %v1660_v58 = vrot.slane %v1985_v33, 9  ;;  %v769_v0 = vrot.slane %v1988_v35, 5  ;;  %v2239_v21 = vld [vmem:[#allocation2 + $0x30] sm:$0xff] }
  0x7e   : > { %1617 = vmatmul.msk.bf16.gmra.mxu3 %vm548_vm5, %v2162_v32  ;;  %v377_v41 = vsel %vm2012_vm6, %v372_v34, %v376_v13  ;;  %v526_v42 = vunpack.c.l.b16 %v367_v26  ;;  %v759_v49 = vsel %vm2165_vm9, %v757_v40, %v758_v2  ;;  %v811_v55 = vunpack.c.l.b16 %v756_v45  ;;  %v2216_v34 = vld [vmem:[#allocation2 + $0x18] sm:$0xff] }
  0x7f   : > { %v527_v44 = vunpack.c.l.b16 %v377_v41  ;;  %v812_v56 = vunpack.c.l.b16 %v759_v49  ;;  %v772_v1 = vrot.slane %v1990_v36, 5  ;;  %v762_v31 = vrot.slane %v2124_v29, 5  ;;  %v2258_v49 = vld [vmem:[#allocation2 + $0x3c] sm:$0xff] }
  0x80   : > { %v770_v2 = vsel %vm2165_vm9, %v1660_v58, %v769_v0  ;;  %v771_v6 = vrot.slane %v769_v0, 4  ;;  %v1659_v33 = vrot.slane %v2112_v5, 9  ;;  %v765_v36 = vrot.slane %v2128_v38, 5 }
  0x81   : > { %v541_v51 = vpack.c.b16 %v527_v44, %v526_v42  ;;  %v827_v4 = vpack.c.b16 %v812_v56, %v811_v55  ;;  %v815_v7 = vunpack.c.l.b16 %v770_v2  ;;  %v764_v35 = vrot.slane %v762_v31, 4 }
  0x82   : > { %v773_v10 = vsel %vm2165_vm9, %v771_v6, %v772_v1  ;;  %v763_v29 = vsel %vm2165_vm9, %v1659_v33, %v762_v31  ;;  %v1661_v5 = vrot.slane %v2065_v54, 9  ;;  %v776_v38 = vrot.slane %v2069_v60, 5  ;;  %v2228_v60 = vld [vmem:[#allocation2 + $0x24] sm:$0xff] }
  0x83   : > { %1611 = vmatmul.msk.bf16.gmra.mxu0 %vm548_vm5, %v541_v51  ;;  %v816_v12 = vunpack.c.l.b16 %v773_v10  ;;  %v766_v14 = vsel %vm2165_vm9, %v764_v35, %v765_v36  ;;  %v813_v15 = vunpack.c.l.b16 %v763_v29  ;;  %v779_v18 = vrot.slane %v2071_v62, 5  ;;  %v2277_v1 = vld [vmem:[#allocation2 + $0x48] sm:$0xff] }
  0x84   : > { %v814_v16 = vunpack.c.l.b16 %v766_v14  ;;  %v777_v20 = vsel %vm2165_vm9, %v1661_v5, %v776_v38  ;;  %v778_v24 = vrot.slane %v776_v38, 4  ;;  %v783_v62 = vrot.slane %v1999_v46, 5  ;;  %v2310_v5 = vld [vmem:[#allocation2 + $0x54] sm:$0xff] }
  0x85   : > { %1650 = vmatmul.msk.bf16.vlgmr.msrb.gmra.mxu1 %vm548_vm5, %v1743_v53  ;;  %v2196_v13 = vpack.c.b16 %v816_v12, %v815_v7  ;;  %v817_v25 = vunpack.c.l.b16 %v777_v20  ;;  %v1662_v26 = vrot.slane %v1997_v43, 9  ;;  %v786_v41 = vrot.slane %v2001_v47, 5 }
  0x86   : > { %v2208_v19 = vpack.c.b16 %v814_v16, %v813_v15  ;;  %v780_v28 = vsel %vm2165_vm9, %v778_v24, %v779_v18  ;;  %v785_v40 = vrot.slane %v783_v62, 4  ;;  %v790_v47 = vrot.slane %v2088_v17, 5 }
  0x87   : > { %v818_v54 = vunpack.c.l.b16 %v780_v28  ;;  %v784_v42 = vsel %vm2165_vm9, %v1662_v26, %v783_v62  ;;  %v793_v55 = vrot.slane %v2092_v22, 5  ;;  %v797_v22 = vrot.slane %v2016_v61, 5  ;;  %v2316_v26 = vld [vmem:[#allocation2 + $0x68] sm:$0x1] }
  0x88   : > { %v787_v44 = vsel %vm2165_vm9, %v785_v40, %v786_v41  ;;  %v819_v46 = vunpack.c.l.b16 %v784_v42  ;;  %v792_v53 = vrot.slane %v790_v47, 4  ;;  %v800_v2 = vrot.slane %v2022_v9, 5  ;;  %v2295_v9 = vld [vmem:[#allocation2 + $0x64] sm:$0xf] }
  0x89   : > { %v2218_v39 = vpack.c.b16 %v818_v54, %v817_v25  ;;  %v820_v45 = vunpack.c.l.b16 %v787_v44  ;;  %v799_v31 = vrot.slane %v797_v22, 4  ;;  %v804_v33 = vrot.slane %v2105_v50, 5 }
  0x8a   : > { %1667 = vmatmul.msk.bf16.vlgmr.msrb.gmra.mxu2 %vm548_vm5, %v827_v4  ;;  %v794_v58 = vsel %vm2165_vm9, %v792_v53, %v793_v55  ;;  %v1664_v4 = vrot.slane %v2005_v52, 9  ;;  %v2293_v52 = vld [vmem:[#allocation2 + $0x60] sm:$0xf]  ;;  %v1015_v14 = vshll.u32 %v2295_v9, 16  ;;  %v1019_v15 = vshrl.u32 %v2295_v9, 16 }
  0x8b   : > { %v2253_v43 = vpack.c.b16 %v820_v45, %v819_v46  ;;  %v822_v0 = vunpack.c.l.b16 %v794_v58  ;;  %v801_v61 = vsel %vm2165_vm9, %v799_v31, %v800_v2  ;;  %v1006_v36 = vshrl.u32 %v2293_v52, 16 }
  0x8c   : > { %v798_v7 = vsel %vm2165_vm9, %v1664_v4, %v797_v22  ;;  %v1009_v29 = vshll.u32 %v2293_v52, 16  ;;  %v1665_v38 = vrot.slane %v2097_v30, 9  ;;  %v806_v50 = vrot.slane %v804_v33, 4  ;;  %v2343_v4 = vld [vmem:[#allocation2 + $0x60] sm:$0xff] }
  0x8d   : > { %v823_v10 = vunpack.c.l.b16 %v798_v7  ;;  %v807_v18 = vrot.slane %v2108_v59, 5  ;;  %v1008_v20 = vrot.slane %v1006_v36, 4  ;;  %v1017_v25 = vrot.slane %v1015_v14, 5 }
  0x8e   : > { %1680 = vmatmul.msk.bf16.vlgmr.msrb.gmra.mxu3 %vm548_vm5, %v1744_v11  ;;  %v1011_v24 = vrot.slane %v1009_v29, 5  ;;  %v1021_v28 = vrot.slane %v1019_v15, 4  ;;  %v805_v40 = vsel %vm2165_vm9, %v1665_v38, %v804_v33  ;;  %v1025_v42 = vshll.u32 %v2316_v26, 16 }
  0x8f   : > { %v808_v30 = vsel %vm2165_vm9, %v806_v50, %v807_v18  ;;  %v825_v46 = vunpack.c.l.b16 %v805_v40 }
  0x90   : > { %v1012_v41 = vor.u32 %v1011_v24, %v1008_v20  ;;  %v1022_v59 = vor.u32 %v1021_v28, %v1017_v25  ;;  %v826_v45 = vunpack.c.l.b16 %v808_v30  ;;  %v1027_v55 = vrot.slane %v1025_v42, 5 }
  0x92   : > { %v1023_v53 = vrot.slane %v1022_v59, 4  ;;  %v2333_v58 = vpack.c.b16 %v826_v45, %v825_v46 }
  0x93   : > { %1689 = vmatmul.msk.bf16.vlgmr.msrb.gmra.mxu0 %vm548_vm5, %v541_v51  ;;  %v1663_v51 = vrot.slane %v2076_v3, 9 }
  0x94   : > { %v1028_v22 = vsel %vm2012_vm6, %v1023_v53, %v1027_v55 }
  0x95   : > { %1651 = vmatmul.msk.bf16.gmra.mxu1 %vm548_vm5, %v1744_v11  ;;  %v791_v56 = vsel %vm2165_vm9, %v1663_v51, %v790_v47  ;;  %v824_v11 = vunpack.c.l.b16 %v801_v61  ;;  %v1013_v51 = vrot.slane %v1012_v41, 4  ;;  %v1032_v7 = vunpack.c.l.b16 %v1028_v22 }
  0x96   : > { %v821_v17 = vunpack.c.l.b16 %v791_v56 }
  0x97   : > { %v2297_v12 = vpack.c.b16 %v824_v11, %v823_v10 }
  0x98   : > { %v2272_v3 = vpack.c.b16 %v822_v0, %v821_v17  ;;  %v1018_v0 = vsel %vm2012_vm6, %v1013_v51, %v1017_v25 }
  0x99   : > { %v1031_v2 = vunpack.c.l.b16 %v1018_v0 }
  0x9a   : > { %1668 = vmatmul.msk.bf16.gmra.mxu2 %vm548_vm5, %v2208_v19 }
  0x9b   : > { %v2351_v10 = vpack.c.b16 %v1032_v7, %v1031_v2 }
  0x9e   : > { %1681 = vmatmul.msk.bf16.gmra.mxu3 %vm548_vm5, %v2216_v34 }
  0xa3   : > { %1690 = vmatmul.msk.bf16.gmra.mxu0 %vm548_vm5, %v2039_v27 }
  0xa5   : > { %1652 = vmatmul.msk.bf16.gmra.mxu1 %vm548_vm5, %v2216_v34 }
  0xaa   : > { %1669 = vmatmul.msk.bf16.gmra.mxu2 %vm548_vm5, %v2196_v13 }
  0xae   : > { %1682 = vmatmul.msk.bf16.gmra.mxu3 %vm548_vm5, %v2228_v60 }
  0xb3   : > { %1691 = vmatmul.msk.bf16.gmra.mxu0 %vm548_vm5, %v2122_v23 }
  0xb5   : > { %1653 = vmatmul.msk.bf16.gmra.mxu1 %vm548_vm5, %v2228_v60 }
  0xba   : > { %1670 = vmatmul.msk.bf16.gmra.mxu2 %vm548_vm5, %v2218_v39 }
  0xbe   : > { %1683 = vmatmul.msk.bf16.gmra.mxu3 %vm548_vm5, %v2239_v21 }
  0xc3   : > { %1692 = vmatmul.msk.bf16.gmra.mxu0 %vm548_vm5, %v2057_v48 }
  0xc5   : > { %1654 = vmatmul.msk.bf16.gmra.mxu1 %vm548_vm5, %v2239_v21 }
  0xca   : > { %1671 = vmatmul.msk.bf16.gmra.mxu2 %vm548_vm5, %v2253_v43 }
  0xce   : > { %1684 = vmatmul.msk.bf16.gmra.mxu3 %vm548_vm5, %v2258_v49 }
  0xd3   : > { %1693 = vmatmul.msk.bf16.gmra.mxu0 %vm548_vm5, %v2138_v63 }
  0xd5   : > { %1655 = vmatmul.msk.bf16.gmra.mxu1 %vm548_vm5, %v2258_v49 }
  0xda   : > { %1672 = vmatmul.msk.bf16.gmra.mxu2 %vm548_vm5, %v2272_v3 }
  0xde   : > { %1685 = vmatmul.msk.bf16.gmra.mxu3 %vm548_vm5, %v2277_v1 }
  0xdf   : > { %v2283_v6 = vpop.f32.mrf.mxu1 }
  0xe3   : > { %1694 = vmatmul.msk.bf16.gmra.mxu0 %vm548_vm5, %v2081_v8 }
  0xe5   : > { %1656 = vmatmul.msk.bf16.gmra.mxu1 %vm548_vm5, %v2277_v1 }
  0xe7   : > { %v2300_v35 = vpop.f32.mrf.mxu1 }
  0xe8   : > { %v2306_v16 = vpop.f32.mrf.mxu2 }
  0xea   : > { %1673 = vmatmul.msk.bf16.gmra.mxu2 %vm548_vm5, %v2297_v12 }
  0xec   : > { %v2314_v62 = vpop.f32.mrf.mxu3 }
  0xed   : > { %v586_v54 = vpop.f32.mrf.mxu0 }
  0xee   : > { %1686 = vmatmul.msk.bf16.gmra.mxu3 %vm548_vm5, %v2310_v5 }
  0xf0   : > { %v2329_v47 = vpop.f32.mrf.mxu2 }
  0xf2   : > { %v2325_v44 = vpop.f32.mrf.mxu1 }
  0xf3   : > { %1695 = vmatmul.msk.bf16.gmra.mxu0 %vm548_vm5, %v2162_v32 }
  0xf4   : > { %v2335_v17 = vpop.f32.mrf.mxu3 }
  0xf5   : > { %1657 = vmatmul.msk.bf16.gmra.mxu1 %vm548_vm5, %v2310_v5  ;;  %v588_v56 = vpop.f32.mrf.mxu0 }
  0xfa   : > { %1674 = vmatmul.msk.bf16.gmra.mxu2 %vm548_vm5, %v2333_v58  ;;  %v2345_v31 = vpop.f32.mrf.mxu1 }
  0xfd   : > { %v2347_v61 = vpop.f32.mrf.mxu2 }
  0xfe   : > { %1687 = vmatmul.msk.bf16.gmra.mxu3 %vm548_vm5, %v2343_v4 }
 0x100   : > { %v591_v11 = vpop.f32.mrf.mxu0 }
 0x101   : > { %v2353_v33 = vpop.f32.mrf.mxu3 }
 0x102   : > { %v702_v36 = vpop.f32.mrf.mxu1 }
 0x103   : > { %1696 = vmatmul.msk.bf16.gmra.mxu0 %vm548_vm5, %v2351_v10  ;;  %v703_v29 = vadd.f32 %v702_v36, %v586_v54 }
 0x105   : > { %v2357_v14 = vpop.f32.mrf.mxu2  ;;  %1699 = vmatmul.msk.bf16.vlgmr.msra.gmra.mxu1 %vm548_vm5, %v2208_v19 }
 0x108   : > { %v593_v15 = vpop.f32.mrf.mxu0 }
 0x109   : > { %v2361_v38 = vpop.f32.mrf.mxu3 }
 0x10a   : > { %1712 = vmatmul.msk.bf16.vlgmr.msra.gmra.mxu2 %vm548_vm5, %v2216_v34  ;;  %v704_v50 = vpop.f32.mrf.mxu1 }
 0x10b   : > { %v705_v18 = vadd.f32 %v704_v50, %v588_v56 }
 0x10d   : > { %v871_v20 = vpop.f32.mrf.mxu2 }
 0x10e   : > { %1721 = vmatmul.msk.bf16.vlgmr.msra.gmra.mxu3 %vm548_vm5, %v2039_v27  ;;  %v911_v24 = vadd.f32 %v871_v20, %v703_v29 }
 0x110   : > { %v1049_v25 = vpop.f32.mrf.mxu0 }
 0x111   : > { %v949_v28 = vpop.f32.mrf.mxu3 }
 0x112   : > { %v989_v54 = vadd.f32 %v949_v28, %v911_v24  ;;  %v707_v40 = vpop.f32.mrf.mxu1 }
 0x113   : > { %1731 = vmatmul.msk.bf16.vlgmr.msra.gmra.mxu0 %vm548_vm5, %v2196_v13  ;;  %v708_v19 = vadd.f32 %v707_v40, %v591_v11 }
 0x114   : > { %v2369_v30 = vadd.f32 %v1049_v25, %v989_v54 }
 0x115   : > { %v873_v41 = vpop.f32.mrf.mxu2  ;;  %1700 = vmatmul.msk.bf16.gmra.mxu1 %vm548_vm5, %v2196_v13 }
 0x116   : > { %v912_v34 = vadd.f32 %v873_v41, %v705_v18 }
 0x118   : > { %v1051_v59 = vpop.f32.mrf.mxu0 }
 0x119   : > { %v951_v42 = vpop.f32.mrf.mxu3 }
 0x11a   : > { %v990_v46 = vadd.f32 %v951_v42, %v912_v34  ;;  %1713 = vmatmul.msk.bf16.gmra.mxu2 %vm548_vm5, %v2228_v60  ;;  %v709_v27 = vpop.f32.mrf.mxu1 }
 0x11b   : > { %v710_v45 = vadd.f32 %v709_v27, %v593_v15 }
 0x11c   : > { %v2375_v51 = vadd.f32 %v1051_v59, %v990_v46 }
 0x11d   : > { %v876_v53 = vpop.f32.mrf.mxu2 }
 0x11e   : > { %1722 = vmatmul.msk.bf16.gmra.mxu3 %vm548_vm5, %v2122_v23  ;;  %v913_v55 = vadd.f32 %v876_v53, %v708_v19 }
 0x120   : > { %v1054_v56 = vpop.f32.mrf.mxu0 }
 0x121   : > { %v954_v0 = vpop.f32.mrf.mxu3 }
 0x122   : > { %v991_v22 = vadd.f32 %v954_v0, %v913_v55  ;;  %v712_v13 = vpop.f32.mrf.mxu1 }
 0x123   : > { %1732 = vmatmul.msk.bf16.gmra.mxu0 %vm548_vm5, %v2218_v39  ;;  %v713_v2 = vadd.f32 %v712_v13, %v2283_v6 }
 0x124   : > { %v2382_v7 = vadd.f32 %v1054_v56, %v991_v22 }
 0x125   : > { %v878_v60 = vpop.f32.mrf.mxu2  ;;  %1701 = vmatmul.msk.bf16.gmra.mxu1 %vm548_vm5, %v2218_v39 }
 0x126   : > { %v914_v11 = vadd.f32 %v878_v60, %v710_v45 }
 0x128   : > { %v1056_v36 = vpop.f32.mrf.mxu0 }
 0x129   : > { %v956_v29 = vpop.f32.mrf.mxu3 }
 0x12a   : > { %v992_v23 = vadd.f32 %v956_v29, %v914_v11  ;;  %1714 = vmatmul.msk.bf16.gmra.mxu2 %vm548_vm5, %v2239_v21  ;;  %v714_v15 = vpop.f32.mrf.mxu1 }
 0x12b   : > { %v715_v50 = vadd.f32 %v714_v15, %v2300_v35 }
 0x12c   : > { %v2389_v18 = vadd.f32 %v1056_v36, %v992_v23 }
 0x12d   : > { %v881_v20 = vpop.f32.mrf.mxu2 }
 0x12e   : > { %1723 = vmatmul.msk.bf16.gmra.mxu3 %vm548_vm5, %v2057_v48  ;;  %v915_v6 = vadd.f32 %v881_v20, %v713_v2 }
 0x130   : > { %v1059_v24 = vpop.f32.mrf.mxu0 }
 0x131   : > { %v959_v25 = vpop.f32.mrf.mxu3 }
 0x132   : > { %v993_v39 = vadd.f32 %v959_v25, %v915_v6  ;;  %v717_v28 = vpop.f32.mrf.mxu1 }
 0x133   : > { %1733 = vmatmul.msk.bf16.gmra.mxu0 %vm548_vm5, %v2253_v43  ;;  %v718_v54 = vadd.f32 %v717_v28, %v2325_v44 }
 0x134   : > { %v2396_v21 = vadd.f32 %v1059_v24, %v993_v39 }
 0x135   : > { %v883_v40 = vpop.f32.mrf.mxu2  ;;  %1702 = vmatmul.msk.bf16.gmra.mxu1 %vm548_vm5, %v2253_v43 }
 0x136   : > { %v916_v35 = vadd.f32 %v883_v40, %v715_v50  ;;  %v2435_v40 = vld [vmem:[#allocation2 + $0x6c] sm:$0xf] }
 0x138   : > { %v1061_v19 = vpop.f32.mrf.mxu0 }
 0x139   : > { %v961_v41 = vpop.f32.mrf.mxu3 }
 0x13a   : > { %v994_v48 = vadd.f32 %v961_v41, %v916_v35  ;;  %1715 = vmatmul.msk.bf16.gmra.mxu2 %vm548_vm5, %v2258_v49  ;;  %v719_v34 = vpop.f32.mrf.mxu1  ;;  %v2437_v35 = vld [vmem:[#allocation2 + $0x70] sm:$0xf] }
 0x13b   : > { %v720_v59 = vadd.f32 %v719_v34, %v2345_v31  ;;  %v1277_v34 = vshll.u32 %v2437_v35, 16 }
 0x13c   : > { %v2403_v42 = vadd.f32 %v1061_v19, %v994_v48  ;;  %v1697_v48 = vrot.slane %v2293_v52, 9 }
 0x13d   : > { %v886_v46 = vpop.f32.mrf.mxu2 }
 0x13e   : > { %1724 = vmatmul.msk.bf16.gmra.mxu3 %vm548_vm5, %v2138_v63  ;;  %v917_v44 = vadd.f32 %v886_v46, %v718_v54  ;;  %v1108_v54 = vrot.slane %v2295_v9, 5  ;;  %v1281_v9 = vshrl.u32 %v2437_v35, 16 }
 0x140   : > { %v1064_v27 = vpop.f32.mrf.mxu0 }
 0x141   : > { %v964_v45 = vpop.f32.mrf.mxu3 }
 0x142   : > { %v995_v43 = vadd.f32 %v964_v45, %v917_v44  ;;  %v722_v53 = vpop.f32.mrf.mxu1  ;;  %v1110_v44 = vrot.slane %v1108_v54, 4 }
 0x143   : > { %1734 = vmatmul.msk.bf16.gmra.mxu0 %vm548_vm5, %v2272_v3  ;;  %v723_v13 = vadd.f32 %v722_v53, %v2306_v16 }
 0x144   : > { %v2409_v55 = vadd.f32 %v1064_v27, %v995_v43  ;;  %v1109_v43 = vsel %vm2165_vm9, %v1697_v48, %v1108_v54 }
 0x145   : > { %v888_v49 = vpop.f32.mrf.mxu2  ;;  %1703 = vmatmul.msk.bf16.gmra.mxu1 %vm548_vm5, %v2272_v3 }
 0x146   : > { %v918_v31 = vadd.f32 %v888_v49, %v720_v59  ;;  %v1111_v59 = vrot.slane %v2316_v26, 5 }
 0x148   : > { %v1066_v56 = vpop.f32.mrf.mxu0  ;;  %v1112_v26 = vsel %vm2165_vm9, %v1110_v44, %v1111_v59 }
 0x149   : > { %v966_v0 = vpop.f32.mrf.mxu3 }
 0x14a   : > { %v996_v22 = vadd.f32 %v966_v0, %v918_v31  ;;  %1716 = vmatmul.msk.bf16.gmra.mxu2 %vm548_vm5, %v2277_v1  ;;  %v724_v63 = vpop.f32.mrf.mxu1  ;;  %v1279_v31 = vrot.slane %v1277_v34, 5 }
 0x14b   : > { %v725_v15 = vadd.f32 %v724_v63, %v2329_v47 }
 0x14c   : > { %v2416_v2 = vadd.f32 %v1066_v56, %v996_v22  ;;  %v1283_v56 = vrot.slane %v1281_v9, 4 }
 0x14d   : > { %v891_v60 = vpop.f32.mrf.mxu2 }
 0x14e   : > { %1725 = vmatmul.msk.bf16.gmra.mxu3 %vm548_vm5, %v2081_v8  ;;  %v919_v11 = vadd.f32 %v891_v60, %v723_v13  ;;  %v1115_v13 = vunpack.c.l.b16 %v1109_v43  ;;  %v1116_v60 = vunpack.c.l.b16 %v1112_v26 }
 0x150   : > { %v1069_v36 = vpop.f32.mrf.mxu0 }
 0x151   : > { %v969_v29 = vpop.f32.mrf.mxu3 }
 0x152   : > { %v997_v3 = vadd.f32 %v969_v29, %v919_v11  ;;  %v727_v23 = vpop.f32.mrf.mxu1 }
 0x153   : > { %1735 = vmatmul.msk.bf16.gmra.mxu0 %vm548_vm5, %v2297_v12  ;;  %v728_v25 = vadd.f32 %v727_v23, %v2347_v61  ;;  %v1268_v61 = vshrl.u32 %v2435_v40, 16 }
 0x154   : > { %v2425_v16 = vadd.f32 %v1069_v36, %v997_v3  ;;  %v1284_v36 = vor.u32 %v1283_v56, %v1279_v31 }
 0x155   : > { %v893_v1 = vpop.f32.mrf.mxu2  ;;  %1704 = vmatmul.msk.bf16.gmra.mxu1 %vm548_vm5, %v2297_v12  ;;  %v1270_v53 = vrot.slane %v1268_v61, 4  ;;  %v1752_v61 = vld [vmem:[#allocation2 + $0x6c] sm:$0xff] }
 0x156   : > { %v920_v50 = vadd.f32 %v893_v1, %v725_v15 }
 0x158   : > { %v1071_v20 = vpop.f32.mrf.mxu0 }
 0x159   : > { %v971_v6 = vpop.f32.mrf.mxu3 }
 0x15a   : > { %v998_v8 = vadd.f32 %v971_v6, %v920_v50  ;;  %1717 = vmatmul.msk.bf16.gmra.mxu2 %vm548_vm5, %v2310_v5  ;;  %v729_v24 = vpop.f32.mrf.mxu1  ;;  %v1117_v50 = vpack.c.b16 %v1116_v60, %v1115_v13  ;;  %v1285_v6 = vrot.slane %v1284_v36, 4 }
 0x15b   : > { %v730_v46 = vadd.f32 %v729_v24, %v2357_v14  ;;  %v325_v14 = vld [vmem:[#allocation2 + $0x74] sm:$0x1]  ;;  %v1370_v24 = vrot.slane %v2437_v35, 5 }
 0x15c   : > { %v2430_v28 = vadd.f32 %v1071_v20, %v998_v8  ;;  %v1287_v29 = vshll.u32 %v325_v14, 16 }
 0x15d   : > { %v896_v39 = vpop.f32.mrf.mxu2 }
 0x15e   : > { %1726 = vmatmul.msk.bf16.gmra.mxu3 %vm548_vm5, %v2162_v32  ;;  %v921_v47 = vadd.f32 %v896_v39, %v728_v25  ;;  %v1271_v32 = vshll.u32 %v2435_v40, 16  ;;  %v1289_v8 = vrot.slane %v1287_v29, 5 }
 0x160   : > { %v1074_v12 = vpop.f32.mrf.mxu0  ;;  %v1273_v49 = vrot.slane %v1271_v32, 5 }
 0x161   : > { %v974_v19 = vpop.f32.mrf.mxu3 }
 0x162   : > { %v999_v41 = vadd.f32 %v974_v19, %v921_v47  ;;  %v732_v5 = vpop.f32.mrf.mxu1  ;;  %v1274_v11 = vor.u32 %v1273_v49, %v1270_v53  ;;  %v1372_v19 = vrot.slane %v1370_v24, 4 }
 0x163   : > { %1736 = vmatmul.msk.bf16.gmra.mxu0 %vm548_vm5, %v2333_v58  ;;  %v733_v3 = vadd.f32 %v732_v5, %v2314_v62 }
 0x164   : > { %v2448_v27 = vadd.f32 %v1074_v12, %v999_v41  ;;  %v1275_v20 = vrot.slane %v1274_v11, 4  ;;  %v1290_v12 = vsel %vm2012_vm6, %v1285_v6, %v1289_v8  ;;  %v1373_v41 = vrot.slane %v325_v14, 5 }
 0x165   : > { %v898_v45 = vpop.f32.mrf.mxu2  ;;  %1705 = vmatmul.msk.bf16.gmra.mxu1 %vm548_vm5, %v2333_v58  ;;  %v1294_v34 = vunpack.c.l.b16 %v1290_v12 }
 0x166   : > { %v922_v52 = vadd.f32 %v898_v45, %v730_v46  ;;  %v1280_v62 = vsel %vm2012_vm6, %v1275_v20, %v1279_v31 }
 0x167   : > { %v1293_v32 = vunpack.c.l.b16 %v1280_v62 }
 0x168   : > { %v1076_v0 = vpop.f32.mrf.mxu0 }
 0x169   : > { %v976_v22 = vpop.f32.mrf.mxu3  ;;  %v1295_v46 = vpack.c.b16 %v1294_v34, %v1293_v32 }
 0x16a   : > { %v1000_v63 = vadd.f32 %v976_v22, %v922_v52  ;;  %1718 = vmatmul.msk.bf16.gmra.mxu2 %vm548_vm5, %v2343_v4  ;;  %v734_v58 = vpop.f32.mrf.mxu1 }
 0x16b   : > { %v735_v54 = vadd.f32 %v734_v58, %v2335_v17 }
 0x16c   : > { %v2459_v23 = vadd.f32 %v1076_v0, %v1000_v63 }
 0x16d   : > { %v901_v15 = vpop.f32.mrf.mxu2 }
 0x16e   : > { %1727 = vmatmul.msk.bf16.gmra.mxu3 %vm548_vm5, %v2351_v10  ;;  %v923_v1 = vadd.f32 %v901_v15, %v733_v3  ;;  %v1729_v10 = vrot.slane %v2435_v40, 9  ;;  %v1374_v40 = vsel %vm2165_vm9, %v1372_v19, %v1373_v41 }
 0x16f   : > { %v1378_v52 = vunpack.c.l.b16 %v1374_v40 }
 0x170   : > { %v1079_v4 = vpop.f32.mrf.mxu0  ;;  %v1371_v57 = vsel %vm2165_vm9, %v1729_v10, %v1370_v24 }
 0x171   : > { %v979_v25 = vpop.f32.mrf.mxu3  ;;  %v1377_v45 = vunpack.c.l.b16 %v1371_v57 }
 0x172   : > { %v1001_v39 = vadd.f32 %v979_v25, %v923_v1  ;;  %v737_v47 = vpop.f32.mrf.mxu1 }
 0x173   : > { %1737 = vmatmul.msk.bf16.gmra.mxu0 %vm548_vm5, %v1117_v50  ;;  %v738_v43 = vadd.f32 %v737_v47, %v2353_v33  ;;  %v1379_v56 = vpack.c.b16 %v1378_v52, %v1377_v45 }
 0x174   : > { %v2471_v5 = vadd.f32 %v1079_v4, %v1001_v39 }
 0x175   : > { %v903_v35 = vpop.f32.mrf.mxu2  ;;  %1706 = vmatmul.msk.bf16.gmra.mxu1 %vm548_vm5, %v1117_v50 }
 0x176   : > { %v924_v48 = vadd.f32 %v903_v35, %v735_v54 }
 0x178   : > { %v1081_v9 = vpop.f32.mrf.mxu0 }
 0x179   : > { %v981_v59 = vpop.f32.mrf.mxu3 }
 0x17a   : > { %v1002_v17 = vadd.f32 %v981_v59, %v924_v48  ;;  %1719 = vmatmul.msk.bf16.gmra.mxu2 %vm548_vm5, %v1752_v61  ;;  %v739_v44 = vpop.f32.mrf.mxu1 }
 0x17b   : > { %v740_v22 = vadd.f32 %v739_v44, %v2361_v38  ;;  %v2493_v38 = vld [vmem:[%s2559_s2] ss:$0 sm:$0xff] }
 0x17c   : > { %v2480_v53 = vadd.f32 %v1081_v9, %v1002_v17 }
 0x17d   : > { %v906_v49 = vpop.f32.mrf.mxu2 }
 0x17e   : > { %1728 = vmatmul.msk.bf16.gmra.mxu3 %vm548_vm5, %v1295_v46  ;;  %v925_v31 = vadd.f32 %v906_v49, %v738_v43 }
 0x180   : > { %v1084_v0 = vpop.f32.mrf.mxu0 }
 0x181   : > { %v984_v37 = vpop.f32.mrf.mxu3 }
 0x182   : > { %v1003_v26 = vadd.f32 %v984_v37, %v925_v31  ;;  %v1133_v14 = vpop.f32.mrf.mxu1 }
 0x183   : > { %1738 = vmatmul.msk.bf16.gmra.mxu0 %vm548_vm5, %v1379_v56  ;;  %v1173_v29 = vadd.f32 %v1133_v14, %v2369_v30 }
 0x184   : > { %v2485_v63 = vadd.f32 %v1084_v0, %v1003_v26 }
 0x185   : > { %v908_v13 = vpop.f32.mrf.mxu2 }
 0x186   : > { %v926_v58 = vadd.f32 %v908_v13, %v740_v22 }
 0x188   : > { %v1086_v33 = vpop.f32.mrf.mxu0 }
 0x189   : > { %v986_v60 = vpop.f32.mrf.mxu3 }
 0x18a   : > { %v1004_v11 = vadd.f32 %v986_v60, %v926_v58  ;;  %v1135_v36 = vpop.f32.mrf.mxu1 }
 0x18b   : > { %v1174_v24 = vadd.f32 %v1135_v36, %v2375_v51 }
 0x18c   : > { %v2488_v3 = vadd.f32 %v1086_v33, %v1004_v11 }
 0x18d   : > { %v1211_v15 = vpop.f32.mrf.mxu2 }
 0x18e   : > { %v1251_v1 = vadd.f32 %v1211_v15, %v1173_v29 }
 0x190   : > { %v1395_v50 = vpop.f32.mrf.mxu0 }
 0x191   : > { %v1311_v20 = vpop.f32.mrf.mxu3 }
 0x192   : > { %v1351_v6 = vadd.f32 %v1311_v20, %v1251_v1  ;;  %v1138_v8 = vpop.f32.mrf.mxu1 }
 0x193   : > { %v1175_v19 = vadd.f32 %v1138_v8, %v2382_v7 }
 0x194   : > { %v1435_v4 = vadd.f32 %v1395_v50, %v1351_v6 }
 0x195   : > { %v1213_v25 = vpop.f32.mrf.mxu2 }
 0x196   : > { %v1455_v30 = vadd.f32 %v2493_v38, %v1435_v4  ;;  %v1252_v39 = vadd.f32 %v1213_v25, %v1174_v24 }
 0x198   : > { %1471 = vst [vmem:[%s1911_s6] sm:$0xff] %v1455_v30  ;;  %v1397_v47 = vpop.f32.mrf.mxu0 }
 0x199   : > { %v1313_v62 = vpop.f32.mrf.mxu3 }
 0x19a   : > { %v1352_v12 = vadd.f32 %v1313_v62, %v1252_v39  ;;  %v1140_v10 = vpop.f32.mrf.mxu1 }
 0x19b   : > { %v1176_v57 = vadd.f32 %v1140_v10, %v2389_v18 }
 0x19c   : > { %v1436_v54 = vadd.f32 %v1397_v47, %v1352_v12 }
 0x19d   : > { %v1216_v41 = vpop.f32.mrf.mxu2 }
 0x19e   : > { %v1456_v35 = vadd.f32 %v2493_v38, %v1436_v54  ;;  %v1253_v48 = vadd.f32 %v1216_v41, %v1175_v19 }
 0x1a0   : > { %1472 = vst [vmem:[%s1911_s6 + $0x8] sm:$0xff] %v1456_v35  ;;  %v1400_v61 = vpop.f32.mrf.mxu0 }
 0x1a1   : > { %v1316_v51 = vpop.f32.mrf.mxu3 }
 0x1a2   : > { %v1353_v32 = vadd.f32 %v1316_v51, %v1253_v48  ;;  %v1143_v34 = vpop.f32.mrf.mxu1 }
 0x1a3   : > { %v1177_v43 = vadd.f32 %v1143_v34, %v2396_v21 }
 0x1a4   : > { %v1437_v9 = vadd.f32 %v1400_v61, %v1353_v32 }
 0x1a5   : > { %v1218_v40 = vpop.f32.mrf.mxu2 }
 0x1a6   : > { %v1457_v59 = vadd.f32 %v2493_v38, %v1437_v9  ;;  %v1254_v17 = vadd.f32 %v1218_v40, %v1176_v57 }
 0x1a8   : > { %1473 = vst [vmem:[%s1911_s6 + $0x10] sm:$0xff] %v1457_v59  ;;  %v1402_v46 = vpop.f32.mrf.mxu0 }
 0x1a9   : > { %v1318_v7 = vpop.f32.mrf.mxu3 }
 0x1aa   : > { %v1354_v44 = vadd.f32 %v1318_v7, %v1254_v17  ;;  %v1145_v45 = vpop.f32.mrf.mxu1 }
 0x1ab   : > { %v1178_v22 = vadd.f32 %v1145_v45, %v2403_v42 }
 0x1ac   : > { %v1438_v52 = vadd.f32 %v1402_v46, %v1354_v44 }
 0x1ad   : > { %v1221_v49 = vpop.f32.mrf.mxu2 }
 0x1ae   : > { %v1458_v31 = vadd.f32 %v2493_v38, %v1438_v52  ;;  %v1255_v56 = vadd.f32 %v1221_v49, %v1177_v43 }
 0x1b0   : > { %1474 = vst [vmem:[%s1911_s6 + $0x18] sm:$0xff] %v1458_v31  ;;  %v1405_v0 = vpop.f32.mrf.mxu0 }
 0x1b1   : > { %v1321_v18 = vpop.f32.mrf.mxu3 }
 0x1b2   : > { %v1355_v37 = vadd.f32 %v1321_v18, %v1255_v56  ;;  %v1148_v26 = vpop.f32.mrf.mxu1 }
 0x1b3   : > { %v1179_v15 = vadd.f32 %v1148_v26, %v2409_v55 }
 0x1b4   : > { %v1439_v14 = vadd.f32 %v1405_v0, %v1355_v37 }
 0x1b5   : > { %v1223_v13 = vpop.f32.mrf.mxu2 }
 0x1b6   : > { %v1459_v58 = vadd.f32 %v2493_v38, %v1439_v14  ;;  %v1256_v33 = vadd.f32 %v1223_v13, %v1178_v22 }
 0x1b8   : > { %1475 = vst [vmem:[%s1911_s6 + $0x20] sm:$0xff] %v1459_v58  ;;  %v1407_v60 = vpop.f32.mrf.mxu0 }
 0x1b9   : > { %v1323_v21 = vpop.f32.mrf.mxu3 }
 0x1ba   : > { %v1356_v11 = vadd.f32 %v1323_v21, %v1256_v33  ;;  %v1150_v36 = vpop.f32.mrf.mxu1 }
 0x1bb   : > { %v1180_v25 = vadd.f32 %v1150_v36, %v2416_v2 }
 0x1bc   : > { %v1440_v29 = vadd.f32 %v1407_v60, %v1356_v11 }
 0x1bd   : > { %v1226_v1 = vpop.f32.mrf.mxu2 }
 0x1be   : > { %v1460_v50 = vadd.f32 %v2493_v38, %v1440_v29  ;;  %v1257_v20 = vadd.f32 %v1226_v1, %v1179_v15 }
 0x1c0   : > { %1476 = vst [vmem:[%s1911_s6 + $0x28] sm:$0xff] %v1460_v50  ;;  %v1410_v6 = vpop.f32.mrf.mxu0 }
 0x1c1   : > { %v1326_v42 = vpop.f32.mrf.mxu3 }
 0x1c2   : > { %v1357_v8 = vadd.f32 %v1326_v42, %v1257_v20  ;;  %v1153_v4 = vpop.f32.mrf.mxu1 }
 0x1c3   : > { %v1181_v19 = vadd.f32 %v1153_v4, %v2425_v16 }
 0x1c4   : > { %v1441_v24 = vadd.f32 %v1410_v6, %v1357_v8 }
 0x1c5   : > { %v1228_v30 = vpop.f32.mrf.mxu2 }
 0x1c6   : > { %v1461_v39 = vadd.f32 %v2493_v38, %v1441_v24  ;;  %v1258_v47 = vadd.f32 %v1228_v30, %v1180_v25 }
 0x1c8   : > { %1477 = vst [vmem:[%s1911_s6 + $0x30] sm:$0xff] %v1461_v39  ;;  %v1412_v62 = vpop.f32.mrf.mxu0 }
 0x1c9   : > { %v1328_v55 = vpop.f32.mrf.mxu3 }
 0x1ca   : > { %v1358_v12 = vadd.f32 %v1328_v55, %v1258_v47  ;;  %v1155_v10 = vpop.f32.mrf.mxu1 }
 0x1cb   : > { %v1182_v9 = vadd.f32 %v1155_v10, %v2430_v28 }
 0x1cc   : > { %v1442_v54 = vadd.f32 %v1412_v62, %v1358_v12 }
 0x1cd   : > { %v1231_v41 = vpop.f32.mrf.mxu2 }
 0x1ce   : > { %v1462_v35 = vadd.f32 %v2493_v38, %v1442_v54  ;;  %v1259_v48 = vadd.f32 %v1231_v41, %v1181_v19 }
 0x1d0   : > { %1478 = vst [vmem:[%s1911_s6 + $0x38] sm:$0xff] %v1462_v35  ;;  %v1415_v61 = vpop.f32.mrf.mxu0 }
 0x1d1   : > { %v1331_v2 = vpop.f32.mrf.mxu3 }
 0x1d2   : > { %v1359_v51 = vadd.f32 %v1331_v2, %v1259_v48  ;;  %v1158_v32 = vpop.f32.mrf.mxu1 }
 0x1d3   : > { %v1183_v45 = vadd.f32 %v1158_v32, %v2448_v27 }
 0x1d4   : > { %v1443_v34 = vadd.f32 %v1415_v61, %v1359_v51 }
 0x1d5   : > { %v1233_v57 = vpop.f32.mrf.mxu2 }
 0x1d6   : > { %v1463_v40 = vadd.f32 %v2493_v38, %v1443_v34  ;;  %v1260_v59 = vadd.f32 %v1233_v57, %v1182_v9 }
 0x1d8   : > { %1479 = vst [vmem:[%s1911_s6 + $0x40] sm:$0xff] %v1463_v40  ;;  %v1417_v17 = vpop.f32.mrf.mxu0 }
 0x1d9   : > { %v1333_v16 = vpop.f32.mrf.mxu3 }
 0x1da   : > { %v1360_v46 = vadd.f32 %v1333_v16, %v1260_v59  ;;  %v1160_v7 = vpop.f32.mrf.mxu1 }
 0x1db   : > { %v1184_v37 = vadd.f32 %v1160_v7, %v2459_v23 }
 0x1dc   : > { %v1444_v44 = vadd.f32 %v1417_v17, %v1360_v46 }
 0x1dd   : > { %v1236_v52 = vpop.f32.mrf.mxu2 }
 0x1de   : > { %v1464_v43 = vadd.f32 %v2493_v38, %v1444_v44  ;;  %v1261_v49 = vadd.f32 %v1236_v52, %v1183_v45 }
 0x1e0   : > { %1480 = vst [vmem:[%s1911_s6 + $0x48] sm:$0xff] %v1464_v43  ;;  %v1420_v31 = vpop.f32.mrf.mxu0 }
 0x1e1   : > { %v1336_v28 = vpop.f32.mrf.mxu3 }
 0x1e2   : > { %v1361_v56 = vadd.f32 %v1336_v28, %v1261_v49  ;;  %v1163_v0 = vpop.f32.mrf.mxu1 }
 0x1e3   : > { %v1185_v60 = vadd.f32 %v1163_v0, %v2471_v5 }
 0x1e4   : > { %v1445_v18 = vadd.f32 %v1420_v31, %v1361_v56 }
 0x1e5   : > { %v1238_v26 = vpop.f32.mrf.mxu2 }
 0x1e6   : > { %v1465_v14 = vadd.f32 %v2493_v38, %v1445_v18  ;;  %v1262_v22 = vadd.f32 %v1238_v26, %v1184_v37 }
 0x1e8   : > { %1481 = vst [vmem:[%s1911_s6 + $0x50] sm:$0xff] %v1465_v14  ;;  %v1422_v13 = vpop.f32.mrf.mxu0 }
 0x1e9   : > { %v1338_v27 = vpop.f32.mrf.mxu3 }
 0x1ea   : > { %v1362_v58 = vadd.f32 %v1338_v27, %v1262_v22  ;;  %v1165_v21 = vpop.f32.mrf.mxu1 }
 0x1eb   : > { %v1186_v20 = vadd.f32 %v1165_v21, %v2480_v53 }
 0x1ec   : > { %v1446_v33 = vadd.f32 %v1422_v13, %v1362_v58 }
 0x1ed   : > { %v1241_v11 = vpop.f32.mrf.mxu2 }
 0x1ee   : > { %v1466_v36 = vadd.f32 %v2493_v38, %v1446_v33  ;;  %v1263_v29 = vadd.f32 %v1241_v11, %v1185_v60 }
 0x1f0   : > { %1482 = vst [vmem:[%s1911_s6 + $0x58] sm:$0xff] %v1466_v36  ;;  %v1425_v15 = vpop.f32.mrf.mxu0 }
 0x1f1   : > { %v1341_v23 = vpop.f32.mrf.mxu3 }
 0x1f2   : > { %v1363_v1 = vadd.f32 %v1341_v23, %v1263_v29  ;;  %v1168_v4 = vpop.f32.mrf.mxu1 }
 0x1f3   : > { %v1187_v39 = vadd.f32 %v1168_v4, %v2485_v63 }
 0x1f4   : > { %v1447_v50 = vadd.f32 %v1425_v15, %v1363_v1 }
 0x1f5   : > { %v1243_v6 = vpop.f32.mrf.mxu2 }
 0x1f6   : > { %v1467_v42 = vadd.f32 %v2493_v38, %v1447_v50  ;;  %v1264_v8 = vadd.f32 %v1243_v6, %v1186_v20 }
 0x1f8   : > { %1483 = vst [vmem:[%s1911_s6 + $0x60] sm:$0xff] %v1467_v42  ;;  %v1427_v5 = vpop.f32.mrf.mxu0 }
 0x1f9   : > { %v1343_v24 = vpop.f32.mrf.mxu3 }
 0x1fa   : > { %v1364_v25 = vadd.f32 %v1343_v24, %v1264_v8  ;;  %v1170_v53 = vpop.f32.mrf.mxu1 }
 0x1fb   : > { %v1188_v41 = vadd.f32 %v1170_v53, %v2488_v3 }
 0x1fc   : > { %v1448_v30 = vadd.f32 %v1427_v5, %v1364_v25 }
 0x1fd   : > { %v1246_v47 = vpop.f32.mrf.mxu2 }
 0x1fe   : > { %v1468_v62 = vadd.f32 %v2493_v38, %v1448_v30  ;;  %v1265_v55 = vadd.f32 %v1246_v47, %v1187_v39 }
 0x200   : > { %1484 = vst [vmem:[%s1911_s6 + $0x68] sm:$0xff] %v1468_v62  ;;  %v1430_v12 = vpop.f32.mrf.mxu0 }
 0x201   : > { %v1346_v10 = vpop.f32.mrf.mxu3 }
 0x202   : > { %v1365_v54 = vadd.f32 %v1346_v10, %v1265_v55 }
 0x204   : > { %v1449_v19 = vadd.f32 %v1430_v12, %v1365_v54 }
 0x205   : > { %v1248_v35 = vpop.f32.mrf.mxu2 }
 0x206   : > { %v1469_v48 = vadd.f32 %v2493_v38, %v1449_v19  ;;  %v1266_v61 = vadd.f32 %v1248_v35, %v1188_v41 }
 0x208   : > { %1485 = vst [vmem:[%s1911_s6 + $0x70] sm:$0xff] %v1469_v48  ;;  %v1432_v51 = vpop.f32.mrf.mxu0 }
 0x209   : > { %v1348_v2 = vpop.f32.mrf.mxu3 }
 0x20a   : > { %v1366_v63 = vadd.f32 %v1348_v2, %v1266_v61 }
 0x20c   : > { %v1450_v32 = vadd.f32 %v1432_v51, %v1366_v63 }
 0x20e   : > { %v1470_v34 = vadd.f32 %v2493_v38, %v1450_v32 }
 0x210   : > { %1486 = vst [vmem:[%s1911_s6 + $0x78] sm:$0xff] %v1470_v34 }
 0x211 PF: > { %s13_s16 = sadd.s32 1, %s1838_s16   ;;  %s2565_s12 = smov %s1830_s14 }
 0x212   : > { %p10_p11 = scmp.ge.s32.totalorder %s13_s16, 6   ;;  %s2566_s13 = smov %s1834_s15 }
 0x213   : > { %s2567_s14 = smov %s2570_s17  ;;  %s2568_s15 = smov %s2574_s18 }
 0x214   :  { %12 = sbr.rel (!%p10_p11) target bundleno = 3 (0x3), region = 92 }

</bundles_post_ra>
